<compile_context>
chip_gen: v6e
topology: v6e:2x2x1
jax: 0.10.0
libtpu: 0.0.40
codegen_flags: <defaults>
</compile_context>

<pallas_src>
import jax
import jax.numpy as jnp
from jax.experimental import pallas as pl
from jax.experimental.pallas import tpu as pltpu  # noqa: F401  (TPU backend)

EPS = 1e-5


def _se_conv_bn_kernel(s_ref, x_ref, w_ref, g_ref, b_ref, o_ref):
    # s_ref: [Cin, 1]    per-channel SE logits (pre-sigmoid)
    # x_ref: [Cin, P]    activations, P = N*H*W (N == 1)
    # w_ref: [Cout, Cin] 1x1 conv weight, bf16 (pre-cast once at prep time)
    # g_ref: [Cout, 1]   batchnorm gamma
    # b_ref: [Cout, 1]   batchnorm beta
    # o_ref: [Cout, P]
    gate = jax.nn.sigmoid(s_ref[...].astype(jnp.float32))              # [Cin, 1]
    # Gate the (cheaper) activation side; cast to bf16 for a single MXU pass.
    xg = (x_ref[...].astype(jnp.float32) * gate).astype(jnp.bfloat16)  # [Cin, P]

    # 1x1 conv == matmul over the channel dim, f32 accumulate on the MXU.
    y = jnp.dot(w_ref[...], xg, preferred_element_type=jnp.float32)    # [Cout, P]

    # BatchNorm2d (training mode): batch statistics over the P positions per
    # channel, biased variance (as PyTorch uses for normalization).
    # Two-pass variance (centered) => provably non-negative, no NaN from
    # rsqrt on near-constant channels. Epilogue is a single fused FMA.
    inv_p = 1.0 / y.shape[1]
    mean = jnp.sum(y, axis=1, keepdims=True) * inv_p                    # [Cout, 1]
    centered = y - mean                                                 # [Cout, P]
    var = jnp.sum(centered * centered, axis=1, keepdims=True) * inv_p   # [Cout, 1]
    scale = g_ref[...].astype(jnp.float32) * jax.lax.rsqrt(var + EPS)   # [Cout, 1]
    o_ref[...] = (centered * scale + b_ref[...].astype(jnp.float32)).astype(o_ref.dtype)


def prepare_conv_weight(conv_w):
    """One-time parameter prep: [Cout, Cin, 1, 1] f32 -> [Cout, Cin] bf16.

    Do this once at init time (not per forward call) so the per-call HBM
    weight stream is the halved bf16 copy and no extra cast kernel runs.
    """
    Cout, Cin = conv_w.shape[0], conv_w.shape[1]
    return conv_w.reshape(Cout, Cin).astype(jnp.bfloat16)


@jax.jit
def se_conv_bn(x253, x249, w_bf16, bn_gamma, bn_beta):
    """x253: [N, Cin, 1, 1], x249: [N, Cin, H, W], w_bf16: [Cout, Cin] bf16.

    Restricted to N == 1 (matches the module's usage); BN statistics are
    computed over all P = N*H*W positions, which for N == 1 is exact.
    """
    N, Cin, H, W = x249.shape
    assert N == 1, "kernel assumes batch size 1 (as in the reference module)"
    Cout = w_bf16.shape[0]
    P = N * H * W

    # NCHW with N == 1: [Cin, P] is a pure reshape (no transpose).
    x_mat = x249.reshape(Cin, P)
    s_col = x253.reshape(Cin, 1)
    g = bn_gamma.reshape(Cout, 1)
    b = bn_beta.reshape(Cout, 1)

    bytes_accessed = (
        Cin * P * 4          # x (f32)
        + Cin * 4            # SE logits (f32)
        + Cout * Cin * 2     # weight (bf16)
        + 2 * Cout * 4       # gamma, beta
        + Cout * P * 4       # output (f32)
    )
    cost = pl.CostEstimate(
        flops=2 * Cout * Cin * P,
        transcendentals=Cin + Cout,   # sigmoid gates + rsqrt per out channel
        bytes_accessed=bytes_accessed,
    )

    out = pl.pallas_call(
        _se_conv_bn_kernel,
        out_shape=jax.ShapeDtypeStruct((Cout, P), jnp.float32),
        in_specs=[
            pl.BlockSpec((Cin, 1), lambda: (0, 0)),
            pl.BlockSpec((Cin, P), lambda: (0, 0)),
            pl.BlockSpec((Cout, Cin), lambda: (0, 0)),
            pl.BlockSpec((Cout, 1), lambda: (0, 0)),
            pl.BlockSpec((Cout, 1), lambda: (0, 0)),
        ],
        out_specs=pl.BlockSpec((Cout, P), lambda: (0, 0)),
        cost_estimate=cost,
    )(s_col, x_mat, w_bf16, g, b)

    # [Cout, P] -> [1, Cout, H, W]: pure reshape, no transpose.
    return out.reshape(N, Cout, H, W)


if __name__ == "__main__":
    N, Cin, H, W = 1, 720, 7, 7
    Cout = 208

    key = jax.random.PRNGKey(0)
    k1, k2, k3, k4, k5 = jax.random.split(key, 5)

    # Inputs (same shapes as the PyTorch module's example tensors)
    x249 = jax.random.normal(k1, (N, Cin, H, W), dtype=jnp.float32)
    x253 = jax.random.normal(k2, (N, Cin, 1, 1), dtype=jnp.float32)

    # Deterministic parameter init (synthetic, not a checkpoint load)
    conv_w = jax.random.normal(k3, (Cout, Cin, 1, 1), dtype=jnp.float32) * 0.02
    bn_gamma = jnp.ones((Cout,), dtype=jnp.float32) + 0.1 * jax.random.normal(
        k4, (Cout,), dtype=jnp.float32)
    bn_beta = 0.1 * jax.random.normal(k5, (Cout,), dtype=jnp.float32)

    # One-time weight prep (bf16, [Cout, Cin]) — outside the per-call path.
    w_bf16 = jax.block_until_ready(prepare_conv_weight(conv_w))

    out = se_conv_bn(x253, x249, w_bf16, bn_gamma, bn_beta)
    jax.block_until_ready(out)
    assert out.shape == (N, Cout, H, W), out.shape
    assert bool(jnp.isfinite(out).all()), "non-finite values in output"
    print("KERNEL_OK")
</pallas_src>

<mosaic_0001>
module attributes {stable_mosaic.version = 11 : i64} {
  func.func @_se_conv_bn_kernel(%arg0: memref<720x1xf32, #tpu.memory_space<vmem>>, %arg1: memref<720x49xf32, #tpu.memory_space<vmem>>, %arg2: memref<208x720xbf16, #tpu.memory_space<vmem>>, %arg3: memref<208x1xf32, #tpu.memory_space<vmem>>, %arg4: memref<208x1xf32, #tpu.memory_space<vmem>>, %arg5: memref<208x49xf32, #tpu.memory_space<vmem>>) attributes {dimension_semantics = [], scalar_prefetch = 0 : i64, scratch_operands = 0 : i64, tpu.core_type = #tpu.core_type<tc>} {
    %c0 = arith.constant 0 : index
    %c0_0 = arith.constant 0 : index
    %0 = vector.load %arg0[%c0, %c0_0] : memref<720x1xf32, #tpu.memory_space<vmem>>, vector<720x1xf32>
    %1 = arith.negf %0 : vector<720x1xf32>
    %2 = math.exp %1 : vector<720x1xf32>
    %cst = arith.constant 1.000000e+00 : f32
    %3 = vector.broadcast %cst : f32 to vector<720x1xf32>
    %4 = arith.addf %3, %2 : vector<720x1xf32>
    %5 = arith.divf %3, %4 : vector<720x1xf32>
    %c0_1 = arith.constant 0 : index
    %c0_2 = arith.constant 0 : index
    %6 = vector.load %arg1[%c0_1, %c0_2] : memref<720x49xf32, #tpu.memory_space<vmem>>, vector<720x49xf32>
    %7 = vector.broadcast %5 : vector<720x1xf32> to vector<720x49xf32>
    %8 = arith.mulf %6, %7 : vector<720x49xf32>
    %9 = arith.truncf %8 : vector<720x49xf32> to vector<720x49xbf16>
    %c0_3 = arith.constant 0 : index
    %c0_4 = arith.constant 0 : index
    %10 = vector.load %arg2[%c0_3, %c0_4] : memref<208x720xbf16, #tpu.memory_space<vmem>>, vector<208x720xbf16>
    %cst_5 = arith.constant dense<0.000000e+00> : vector<208x49xf32>
    %11 = tpu.matmul %10, %9, %cst_5 {dimension_numbers = #tpu.dot_dimension_numbers<[1], [0], [0], [1], [0, 0, 1, 1], [], []>} : vector<208x720xbf16>, vector<720x49xbf16>, vector<208x49xf32> -> vector<208x49xf32>
    %cst_6 = arith.constant dense<0.000000e+00> : vector<208xf32>
    %12 = vector.multi_reduction <add>, %11, %cst_6 [1] : vector<208x49xf32> to vector<208xf32>
    %13 = vector.shape_cast %12 : vector<208xf32> to vector<208x1xf32>
    %cst_7 = arith.constant 0.0204081628 : f32
    %14 = vector.broadcast %cst_7 : f32 to vector<208x1xf32>
    %15 = arith.mulf %13, %14 : vector<208x1xf32>
    %16 = vector.broadcast %15 : vector<208x1xf32> to vector<208x49xf32>
    %17 = arith.subf %11, %16 : vector<208x49xf32>
    %18 = arith.mulf %17, %17 : vector<208x49xf32>
    %cst_8 = arith.constant dense<0.000000e+00> : vector<208xf32>
    %19 = vector.multi_reduction <add>, %18, %cst_8 [1] : vector<208x49xf32> to vector<208xf32>
    %20 = vector.shape_cast %19 : vector<208xf32> to vector<208x1xf32>
    %cst_9 = arith.constant 0.0204081628 : f32
    %21 = vector.broadcast %cst_9 : f32 to vector<208x1xf32>
    %22 = arith.mulf %20, %21 : vector<208x1xf32>
    %c0_10 = arith.constant 0 : index
    %c0_11 = arith.constant 0 : index
    %23 = vector.load %arg3[%c0_10, %c0_11] : memref<208x1xf32, #tpu.memory_space<vmem>>, vector<208x1xf32>
    %cst_12 = arith.constant 9.99999974E-6 : f32
    %24 = vector.broadcast %cst_12 : f32 to vector<208x1xf32>
    %25 = arith.addf %22, %24 : vector<208x1xf32>
    %26 = math.rsqrt %25 : vector<208x1xf32>
    %27 = arith.mulf %23, %26 : vector<208x1xf32>
    %28 = vector.broadcast %27 : vector<208x1xf32> to vector<208x49xf32>
    %29 = arith.mulf %17, %28 : vector<208x49xf32>
    %c0_13 = arith.constant 0 : index
    %c0_14 = arith.constant 0 : index
    %30 = vector.load %arg4[%c0_13, %c0_14] : memref<208x1xf32, #tpu.memory_space<vmem>>, vector<208x1xf32>
    %31 = vector.broadcast %30 : vector<208x1xf32> to vector<208x49xf32>
    %32 = arith.addf %29, %31 : vector<208x49xf32>
    %c0_15 = arith.constant 0 : index
    %c0_16 = arith.constant 0 : index
    %33 = vector.load %arg5[%c0_15, %c0_16] : memref<208x49xf32, #tpu.memory_space<vmem>>, vector<208x49xf32>
    tpu.vector_store %arg5[%c0_15, %c0_16], %32 {strides = array<i32>} : memref<208x49xf32, #tpu.memory_space<vmem>>, vector<208x49xf32>,
    return
  }
}

</mosaic_0001>

<bundles_post_ra>
// kernel: se_conv_bn.1
= control target key start
LH: loop header
LB: loop body
LE: loop exit
PB: predicated region body
PF: predicated region fallthrough
CT: control target
= control target key end

     0   :  { %v3882_v0 = vmov 0   ;;  %vm1781_vm0 = vcmask 654336   ;;  %vm2232_vm1 = vcmask 400384   ;;  %s5462_s0 = inlined_call_operand.vmem [shape: f32[720,1], index: 0, kind: input, shape index: {}]   ;;  %s5463_s2 = inlined_call_operand.vmem [shape: bf16[208,720], index: 2, kind: input, shape index: {}]   ;;  %s5464_s1 = inlined_call_operand.vmem [shape: f32[720,49], index: 1, kind: input, shape index: {}]   ;;  %s5465_s4 = inlined_call_operand.vmem [shape: f32[208,1], index: 4, kind: input, shape index: {}]   ;;  %s5466_s3 = inlined_call_operand.vmem [shape: f32[208,1], index: 3, kind: input, shape index: {}]   ;;  %s5467_s5 = inlined_call_operand.vmem [shape: f32[208,49], index: 5, kind: output, shape index: {}]  }
   0x1   :  { %3352 = vset.pattern.permute.xlu1 %v3882_v0  ;;  %3351 = vset.pattern.permute.xlu0 %v3882_v0  ;;  %v23_v1 = vld [vmem:[%s5462_s0 + $0x10] sm:$0xff]  ;;  %v21_v2 = vld [vmem:[%s5462_s0] sm:$0xff]  ;;  %v24_v3 = vld [vmem:[%s5462_s0 + $0x18] sm:$0xff] }
   0x2   :  { %v2967_v4 = vmul.f32 -1.442695, %v23_v1  ;;  %v2965_v5 = vmul.f32 -1.442695, %v21_v2  ;;  %v2968_v6 = vmul.f32 -1.442695, %v24_v3 }
   0x3   :  { %v22_v7 = vld [vmem:[%s5462_s0 + $0x8] sm:$0xff]  ;;  %v51_v8 = vld [vmem:[%s5462_s0 + $0xf0] sm:$0xff]  ;;  %v25_v9 = vld [vmem:[%s5462_s0 + $0x20] sm:$0xff] }
   0x4   :  { %3470 = vpow2.f32 %v2967_v4  ;;  %v2966_v10 = vmul.f32 -1.442695, %v22_v7  ;;  %v2995_v11 = vmul.f32 -1.442695, %v51_v8  ;;  %v2969_v12 = vmul.f32 -1.442695, %v25_v9 }
   0x5   :  { %3472 = vpow2.f32 %v2965_v5  ;;  %v35_v13 = vld [vmem:[%s5462_s0 + $0x70] sm:$0xff]  ;;  %v52_v14 = vld [vmem:[%s5462_s0 + $0xf8] sm:$0xff]  ;;  %v49_v15 = vld [vmem:[%s5462_s0 + $0xe0] sm:$0xff] }
   0x6   :  { %3474 = vpow2.f32 %v2968_v6  ;;  %v2979_v16 = vmul.f32 -1.442695, %v35_v13  ;;  %v2996_v17 = vmul.f32 -1.442695, %v52_v14  ;;  %v36_v18 = vld [vmem:[%s5462_s0 + $0x78] sm:$0xff]  ;;  %v33_v19 = vld [vmem:[%s5462_s0 + $0x60] sm:$0xff] }
   0x7   :  { %3476 = vpow2.f32 %v2966_v10  ;;  %v2993_v20 = vmul.f32 -1.442695, %v49_v15  ;;  %v50_v21 = vld [vmem:[%s5462_s0 + $0xe8] sm:$0xff]  ;;  %v2980_v22 = vmul.f32 -1.442695, %v36_v18  ;;  %v47_v23 = vld [vmem:[%s5462_s0 + $0xd0] sm:$0xff] }
   0x8   :  { %3478 = vpow2.f32 %v2995_v11  ;;  %v2977_v24 = vmul.f32 -1.442695, %v33_v19  ;;  %v34_v25 = vld [vmem:[%s5462_s0 + $0x68] sm:$0xff]  ;;  %v2994_v26 = vmul.f32 -1.442695, %v50_v21  ;;  %v31_v27 = vld [vmem:[%s5462_s0 + $0x50] sm:$0xff] }
   0x9   :  { %3480 = vpow2.f32 %v2969_v12  ;;  %v2991_v28 = vmul.f32 -1.442695, %v47_v23  ;;  %v48_v29 = vld [vmem:[%s5462_s0 + $0xd8] sm:$0xff]  ;;  %v2978_v30 = vmul.f32 -1.442695, %v34_v25  ;;  %v45_v58 = vld [vmem:[%s5462_s0 + $0xc0] sm:$0xff] }
   0xa   :  { %3482 = vpow2.f32 %v2979_v16  ;;  %v2975_v31 = vmul.f32 -1.442695, %v31_v27  ;;  %v2992_v32 = vmul.f32 -1.442695, %v48_v29  ;;  %v32_v61 = vld [vmem:[%s5462_s0 + $0x58] sm:$0xff]  ;;  %v29_v1 = vld [vmem:[%s5462_s0 + $0x40] sm:$0xff] }
   0xb   :  { %3484 = vpow2.f32 %v2996_v17  ;;  %v2989_v4 = vmul.f32 -1.442695, %v45_v58  ;;  %v46_v5 = vld [vmem:[%s5462_s0 + $0xc8] sm:$0xff]  ;;  %v2976_v8 = vmul.f32 -1.442695, %v32_v61  ;;  %v43_v9 = vld [vmem:[%s5462_s0 + $0xb0] sm:$0xff] }
   0xc   :  { %3486 = vpow2.f32 %v2993_v20  ;;  %v2973_v11 = vmul.f32 -1.442695, %v29_v1  ;;  %v30_v12 = vld [vmem:[%s5462_s0 + $0x48] sm:$0xff]  ;;  %v2990_v14 = vmul.f32 -1.442695, %v46_v5  ;;  %v27_v15 = vld [vmem:[%s5462_s0 + $0x30] sm:$0xff] }
   0xd   :  { %3488 = vpow2.f32 %v2980_v22  ;;  %v2987_v17 = vmul.f32 -1.442695, %v43_v9  ;;  %v44_v18 = vld [vmem:[%s5462_s0 + $0xb8] sm:$0xff]  ;;  %v2974_v20 = vmul.f32 -1.442695, %v30_v12  ;;  %v41_v21 = vld [vmem:[%s5462_s0 + $0xa0] sm:$0xff] }
   0xe   :  { %3490 = vpow2.f32 %v2977_v24  ;;  %v2971_v23 = vmul.f32 -1.442695, %v27_v15  ;;  %v28_v24 = vld [vmem:[%s5462_s0 + $0x38] sm:$0xff]  ;;  %v26_v27 = vld [vmem:[%s5462_s0 + $0x28] sm:$0xff]  ;;  %v2985_v29 = vmul.f32 -1.442695, %v41_v21 }
   0xf   :  { %3492 = vpow2.f32 %v2994_v26  ;;  %v2988_v26 = vmul.f32 -1.442695, %v44_v18  ;;  %v100_v12 = vld [vmem:[%s5462_s0 + $0x278] sm:$0xff]  ;;  %v99_v15 = vld [vmem:[%s5462_s0 + $0x270] sm:$0xff]  ;;  %v98_v18 = vld [vmem:[%s5462_s0 + $0x268] sm:$0xff] }
  0x10   :  { %3494 = vpow2.f32 %v2991_v28  ;;  %v3044_v21 = vmul.f32 -1.442695, %v100_v12 }
  0x11   :  { %v3471_v33 = vpop.eup %3470  ;;  %3496 = vpow2.f32 %v2978_v30  ;;  %v42_v30 = vld [vmem:[%s5462_s0 + $0xa8] sm:$0xff] }
  0x12   :  { %v3473_v34 = vpop.eup %3472  ;;  %v383_v35 = vadd.f32 1.0, %v3471_v33  ;;  %3498 = vpow2.f32 %v2975_v31  ;;  %v40_v33 = vld [vmem:[%s5462_s0 + $0x98] sm:$0xff] }
  0x13   :  { %v3475_v36 = vpop.eup %3474  ;;  %v381_v37 = vadd.f32 1.0, %v3473_v34  ;;  %3500 = vpow2.f32 %v2992_v32  ;;  %v2972_v32 = vmul.f32 -1.442695, %v28_v24 }
  0x14   :  { %v3477_v38 = vpop.eup %3476  ;;  %3502 = vrcp.f32 %v383_v35  ;;  %v384_v39 = vadd.f32 1.0, %v3475_v36  ;;  %v2970_v35 = vmul.f32 -1.442695, %v26_v27  ;;  %v39_v36 = vld [vmem:[%s5462_s0 + $0x90] sm:$0xff] }
  0x15   :  { %v3479_v40 = vpop.eup %3478  ;;  %3504 = vrcp.f32 %v381_v37  ;;  %v382_v41 = vadd.f32 1.0, %v3477_v38  ;;  %v2986_v38 = vmul.f32 -1.442695, %v42_v30 }
  0x16   :  { %v3481_v42 = vpop.eup %3480  ;;  %3506 = vrcp.f32 %v384_v39  ;;  %v411_v43 = vadd.f32 1.0, %v3479_v40  ;;  %v38_v39 = vld [vmem:[%s5462_s0 + $0x88] sm:$0xff] }
  0x17   :  { %v3483_v44 = vpop.eup %3482  ;;  %3508 = vrcp.f32 %v382_v41  ;;  %v385_v45 = vadd.f32 1.0, %v3481_v42  ;;  %v2984_v41 = vmul.f32 -1.442695, %v40_v33  ;;  %v37_v42 = vld [vmem:[%s5462_s0 + $0x80] sm:$0xff] }
  0x18   :  { %v3485_v46 = vpop.eup %3484  ;;  %3510 = vrcp.f32 %v411_v43  ;;  %v395_v47 = vadd.f32 1.0, %v3483_v44  ;;  %v2983_v44 = vmul.f32 -1.442695, %v39_v36 }
  0x19   :  { %v3487_v48 = vpop.eup %3486  ;;  %3512 = vrcp.f32 %v385_v45  ;;  %v412_v49 = vadd.f32 1.0, %v3485_v46  ;;  %v2982_v46 = vmul.f32 -1.442695, %v38_v39 }
  0x1a   :  { %v3489_v50 = vpop.eup %3488  ;;  %3514 = vrcp.f32 %v395_v47  ;;  %v409_v51 = vadd.f32 1.0, %v3487_v48  ;;  %v2981_v48 = vmul.f32 -1.442695, %v37_v42 }
  0x1b   :  { %v3491_v52 = vpop.eup %3490  ;;  %3516 = vrcp.f32 %v412_v49  ;;  %v396_v53 = vadd.f32 1.0, %v3489_v50 }
  0x1c   :  { %v3493_v54 = vpop.eup %3492  ;;  %3518 = vrcp.f32 %v409_v51  ;;  %v393_v55 = vadd.f32 1.0, %v3491_v52 }
  0x1d   :  { %v3495_v56 = vpop.eup %3494  ;;  %3520 = vrcp.f32 %v396_v53  ;;  %v410_v57 = vadd.f32 1.0, %v3493_v54 }
  0x1e   :  { %v3497_v59 = vpop.eup %3496  ;;  %3522 = vrcp.f32 %v393_v55  ;;  %v407_v60 = vadd.f32 1.0, %v3495_v56 }
  0x1f   :  { %v3499_v62 = vpop.eup %3498  ;;  %3524 = vrcp.f32 %v410_v57  ;;  %v394_v63 = vadd.f32 1.0, %v3497_v59 }
  0x20   :  { %v3501_v2 = vpop.eup %3500  ;;  %3526 = vrcp.f32 %v407_v60  ;;  %v391_v3 = vadd.f32 1.0, %v3499_v62 }
  0x21   :  { %v3503_v6 = vpop.eup %3502  ;;  %3528 = vrcp.f32 %v394_v63  ;;  %v408_v7 = vadd.f32 1.0, %v3501_v2 }
  0x22   :  { %v3505_v10 = vpop.eup %3504  ;;  %753 = vperm.xlu1 %3352, %v3503_v6   ;;  %3530 = vrcp.f32 %v391_v3 }
  0x23   :  { %v3507_v13 = vpop.eup %3506  ;;  %743 = vperm.xlu0 %3351, %v3505_v10   ;;  %3532 = vrcp.f32 %v408_v7 }
  0x24   :  { %v3509_v16 = vpop.eup %3508  ;;  %3534 = vpow2.f32 %v2989_v4 }
  0x25   :  { %v3511_v19 = vpop.eup %3510  ;;  %3536 = vpow2.f32 %v2976_v8 }
  0x26   :  { %v3513_v22 = vpop.eup %3512  ;;  %758 = vperm.xlu1 %3352, %v3507_v13   ;;  %3538 = vpow2.f32 %v2973_v11 }
  0x27   :  { %v3515_v25 = vpop.eup %3514  ;;  %748 = vperm.xlu0 %3351, %v3509_v16   ;;  %3540 = vpow2.f32 %v2990_v14 }
  0x28   :  { %v3517_v28 = vpop.eup %3516  ;;  %3542 = vpow2.f32 %v2987_v17 }
  0x29   :  { %v3519_v31 = vpop.eup %3518  ;;  %3544 = vpow2.f32 %v2974_v20 }
  0x2a   :  { %v3521_v34 = vpop.eup %3520  ;;  %893 = vperm.xlu1 %3352, %v3511_v19   ;;  %3546 = vpow2.f32 %v2971_v23 }
  0x2b   :  { %v3523_v37 = vpop.eup %3522  ;;  %763 = vperm.xlu0 %3351, %v3513_v22   ;;  %3548 = vpow2.f32 %v2988_v26  ;;  %v97_v22 = vld [vmem:[%s5462_s0 + $0x260] sm:$0xff]  ;;  %v96_v26 = vld [vmem:[%s5462_s0 + $0x258] sm:$0xff] }
  0x2c   :  { %v3525_v40 = vpop.eup %3524  ;;  %3550 = vpow2.f32 %v2985_v29  ;;  %v95_v29 = vld [vmem:[%s5462_s0 + $0x250] sm:$0xff] }
  0x2d   :  { %v3527_v43 = vpop.eup %3526  ;;  %3552 = vpow2.f32 %v2972_v32  ;;  %v94_v32 = vld [vmem:[%s5462_s0 + $0x248] sm:$0xff] }
  0x2e   :  { %v3529_v45 = vpop.eup %3528  ;;  %813 = vperm.xlu1 %3352, %v3515_v25   ;;  %3554 = vpow2.f32 %v2970_v35  ;;  %v3043_v25 = vmul.f32 -1.442695, %v99_v15  ;;  %v93_v35 = vld [vmem:[%s5462_s0 + $0x240] sm:$0xff] }
  0x2f   :  { %v3531_v47 = vpop.eup %3530  ;;  %898 = vperm.xlu0 %3351, %v3517_v28   ;;  %3556 = vpow2.f32 %v2986_v38  ;;  %v3042_v28 = vmul.f32 -1.442695, %v98_v18  ;;  %v84_v38 = vld [vmem:[%s5462_s0 + $0x1f8] sm:$0xff] }
  0x30   :  { %v3533_v49 = vpop.eup %3532  ;;  %3558 = vpow2.f32 %v2984_v41  ;;  %v83_v41 = vld [vmem:[%s5462_s0 + $0x1f0] sm:$0xff] }
  0x31   :  { %v3535_v50 = vpop.eup %3534  ;;  %3560 = vpow2.f32 %v2983_v44  ;;  %v68_v44 = vld [vmem:[%s5462_s0 + $0x178] sm:$0xff] }
  0x32   :  { %v3537_v51 = vpop.eup %3536  ;;  %883 = vperm.xlu1 %3352, %v3519_v31   ;;  %v405_v52 = vadd.f32 1.0, %v3535_v50  ;;  %3562 = vpow2.f32 %v2982_v46  ;;  %v3041_v31 = vmul.f32 -1.442695, %v97_v22  ;;  %v3028_v46 = vmul.f32 -1.442695, %v84_v38  ;;  %v92_v50 = vld [vmem:[%s5462_s0 + $0x238] sm:$0xff] }
  0x33   :  { %v3539_v53 = vpop.eup %3538  ;;  %818 = vperm.xlu0 %3351, %v3521_v34   ;;  %v392_v54 = vadd.f32 1.0, %v3537_v51  ;;  %3564 = vpow2.f32 %v2981_v48  ;;  %v3040_v34 = vmul.f32 -1.442695, %v96_v26 }
  0x34   :  { %v3541_v55 = vpop.eup %3540  ;;  %3566 = vrcp.f32 %v405_v52  ;;  %v389_v56 = vadd.f32 1.0, %v3539_v53  ;;  %v3012_v52 = vmul.f32 -1.442695, %v68_v44  ;;  %v91_v53 = vld [vmem:[%s5462_s0 + $0x230] sm:$0xff] }
  0x35   :  { %v3543_v57 = vpop.eup %3542  ;;  %3568 = vrcp.f32 %v392_v54  ;;  %v406_v58 = vadd.f32 1.0, %v3541_v55 }
  0x36   :  { %v3545_v59 = vpop.eup %3544  ;;  %803 = vperm.xlu1 %3352, %v3523_v37   ;;  %3570 = vrcp.f32 %v389_v56  ;;  %v403_v60 = vadd.f32 1.0, %v3543_v57  ;;  %v3039_v37 = vmul.f32 -1.442695, %v95_v29  ;;  %v82_v56 = vld [vmem:[%s5462_s0 + $0x1e8] sm:$0xff] }
  0x37   :  { %v3547_v61 = vpop.eup %3546  ;;  %888 = vperm.xlu0 %3351, %v3525_v40   ;;  %3572 = vrcp.f32 %v406_v58  ;;  %v390_v62 = vadd.f32 1.0, %v3545_v59  ;;  %v3038_v40 = vmul.f32 -1.442695, %v94_v32  ;;  %v3036_v58 = vmul.f32 -1.442695, %v92_v50  ;;  %v81_v59 = vld [vmem:[%s5462_s0 + $0x1e0] sm:$0xff] }
  0x38   :  { %v3549_v63 = vpop.eup %3548  ;;  %3574 = vrcp.f32 %v403_v60  ;;  %v387_v1 = vadd.f32 1.0, %v3547_v61  ;;  %v3035_v61 = vmul.f32 -1.442695, %v91_v53  ;;  %v66_v29 = vld [vmem:[%s5462_s0 + $0x168] sm:$0xff]  ;;  %v65_v32 = vld [vmem:[%s5462_s0 + $0x160] sm:$0xff]  ;;  %v63_v53 = vld [vmem:[%s5462_s0 + $0x150] sm:$0xff] }
  0x39   :  { %v3551_v2 = vpop.eup %3550  ;;  %3576 = vrcp.f32 %v390_v62  ;;  %v404_v3 = vadd.f32 1.0, %v3549_v63  ;;  %v3026_v63 = vmul.f32 -1.442695, %v82_v56  ;;  %v3010_v38 = vmul.f32 -1.442695, %v66_v29  ;;  %v88_v56 = vld [vmem:[%s5462_s0 + $0x218] sm:$0xff] }
  0x3a   :  { %v3553_v4 = vpop.eup %3552  ;;  %873 = vperm.xlu1 %3352, %v3527_v43   ;;  %3578 = vrcp.f32 %v387_v1  ;;  %v401_v5 = vadd.f32 1.0, %v3551_v2  ;;  %v3037_v43 = vmul.f32 -1.442695, %v93_v35  ;;  %v3025_v2 = vmul.f32 -1.442695, %v81_v59  ;;  %v90_v35 = vld [vmem:[%s5462_s0 + $0x228] sm:$0xff] }
  0x3b   :  { %v3555_v6 = vpop.eup %3554  ;;  %808 = vperm.xlu0 %3351, %v3529_v45   ;;  %3580 = vrcp.f32 %v404_v3  ;;  %v388_v7 = vadd.f32 1.0, %v3553_v4  ;;  %v3355_v50 = vld [vmem:[%s5463_s2 + $0x4] ss:$24 sps:$4 sm:$0xff]   ;;  %v87_v59 = vld [vmem:[%s5462_s0 + $0x210] sm:$0xff] }
  0x3c   :  { %v3557_v8 = vpop.eup %3556  ;;  %3582 = vrcp.f32 %v401_v5  ;;  %v386_v9 = vadd.f32 1.0, %v3555_v6  ;;  %1853 = vmatprep.mubr.bf16.mxu0 %v3355_v50  ;;  %v60_v50 = vld [vmem:[%s5462_s0 + $0x138] sm:$0xff] }
  0x3d   :  { %v3559_v10 = vpop.eup %3558  ;;  %3584 = vrcp.f32 %v388_v7  ;;  %v402_v11 = vadd.f32 1.0, %v3557_v8 }
  0x3e   :  { %v3561_v13 = vpop.eup %3560  ;;  %793 = vperm.xlu1 %3352, %v3531_v47   ;;  %3586 = vrcp.f32 %v386_v9  ;;  %v400_v14 = vadd.f32 1.0, %v3559_v10  ;;  %v67_v47 = vld [vmem:[%s5462_s0 + $0x170] sm:$0xff] }
  0x3f   :  { %v3563_v16 = vpop.eup %3562  ;;  %878 = vperm.xlu0 %3351, %v3533_v49   ;;  %3588 = vrcp.f32 %v402_v11  ;;  %v399_v17 = vadd.f32 1.0, %v3561_v13  ;;  %v3027_v49 = vmul.f32 -1.442695, %v83_v41  ;;  %v3011_v55 = vmul.f32 -1.442695, %v67_v47 }
  0x40   :  { %v3565_v19 = vpop.eup %3564  ;;  %3590 = vrcp.f32 %v400_v14  ;;  %v398_v20 = vadd.f32 1.0, %v3563_v16 }
  0x41   :  { %v3567_v23 = vpop.eup %3566  ;;  %3592 = vrcp.f32 %v399_v17  ;;  %v397_v24 = vadd.f32 1.0, %v3565_v19 }
  0x42   :  { %v3569_v27 = vpop.eup %3568  ;;  %863 = vperm.xlu1 %3352, %v3567_v23   ;;  %3594 = vrcp.f32 %v398_v20 }
  0x43   :  { %v3571_v30 = vpop.eup %3570  ;;  %798 = vperm.xlu0 %3351, %v3569_v27   ;;  %3596 = vrcp.f32 %v397_v24 }
  0x44   :  { %v3573_v33 = vpop.eup %3572  ;;  %3598 = vpow2.f32 %v3044_v21 }
  0x45   :  { %v3575_v36 = vpop.eup %3574  ;;  %3600 = vpow2.f32 %v3043_v25 }
  0x46   :  { %v3577_v39 = vpop.eup %3576  ;;  %783 = vperm.xlu1 %3352, %v3571_v30   ;;  %3602 = vpow2.f32 %v3042_v28 }
  0x47   :  { %v3579_v42 = vpop.eup %3578  ;;  %868 = vperm.xlu0 %3351, %v3573_v33   ;;  %3604 = vpow2.f32 %v3041_v31 }
  0x48   :  { %v3581_v45 = vpop.eup %3580  ;;  %3606 = vpow2.f32 %v3040_v34 }
  0x49   :  { %v3583_v48 = vpop.eup %3582  ;;  %3608 = vpow2.f32 %v3039_v37 }
  0x4a   :  { %v3585_v51 = vpop.eup %3584  ;;  %853 = vperm.xlu1 %3352, %v3575_v36   ;;  %3610 = vpow2.f32 %v3038_v40 }
  0x4b   :  { %v3587_v54 = vpop.eup %3586  ;;  %788 = vperm.xlu0 %3351, %v3577_v39   ;;  %3612 = vpow2.f32 %v3037_v43  ;;  %v89_v39 = vld [vmem:[%s5462_s0 + $0x220] sm:$0xff]  ;;  %v80_v43 = vld [vmem:[%s5462_s0 + $0x1d8] sm:$0xff] }
  0x4c   :  { %v3589_v57 = vpop.eup %3588  ;;  %3614 = vpow2.f32 %v3028_v46  ;;  %v79_v46 = vld [vmem:[%s5462_s0 + $0x1d0] sm:$0xff] }
  0x4d   :  { %v3591_v60 = vpop.eup %3590  ;;  %3616 = vpow2.f32 %v3027_v49  ;;  %v64_v49 = vld [vmem:[%s5462_s0 + $0x158] sm:$0xff] }
  0x4e   :  { %v3593_v62 = vpop.eup %3592  ;;  %773 = vperm.xlu1 %3352, %v3579_v42   ;;  %3618 = vpow2.f32 %v3012_v52  ;;  %v3009_v42 = vmul.f32 -1.442695, %v65_v32  ;;  %v3024_v52 = vmul.f32 -1.442695, %v80_v43 }
  0x4f   :  { %v3595_v1 = vpop.eup %3594  ;;  %858 = vperm.xlu0 %3351, %v3581_v45   ;;  %3620 = vpow2.f32 %v3011_v55  ;;  %v3034_v45 = vmul.f32 -1.442695, %v90_v35  ;;  %v3023_v55 = vmul.f32 -1.442695, %v79_v46 }
  0x50   :  { %v3597_v3 = vpop.eup %3596  ;;  %3622 = vpow2.f32 %v3036_v58  ;;  %v3008_v58 = vmul.f32 -1.442695, %v64_v49 }
  0x51   :  { %v3599_v4 = vpop.eup %3598  ;;  %3624 = vpow2.f32 %v3035_v61  ;;  %v3007_v61 = vmul.f32 -1.442695, %v63_v53  ;;  %v59_v53 = vld [vmem:[%s5462_s0 + $0x130] sm:$0xff] }
  0x52   :  { %v3601_v5 = vpop.eup %3600  ;;  %843 = vperm.xlu1 %3352, %v3583_v48   ;;  %v460_v6 = vadd.f32 1.0, %v3599_v4  ;;  %3626 = vpow2.f32 %v3026_v63  ;;  %v3033_v48 = vmul.f32 -1.442695, %v89_v39  ;;  %v77_v63 = vld [vmem:[%s5462_s0 + $0x1c0] sm:$0xff]  ;;  %v3031_v4 = vmul.f32 -1.442695, %v87_v59 }
  0x53   :  { %v3603_v7 = vpop.eup %3602  ;;  %778 = vperm.xlu0 %3351, %v3585_v51   ;;  %v459_v8 = vadd.f32 1.0, %v3601_v5  ;;  %3628 = vpow2.f32 %v3025_v2  ;;  %v3032_v2 = vmul.f32 -1.442695, %v88_v56  ;;  %v62_v5 = vld [vmem:[%s5462_s0 + $0x148] sm:$0xff] }
  0x54   :  { %v3605_v9 = vpop.eup %3604  ;;  %3630 = vrcp.f32 %v460_v6  ;;  %v458_v10 = vadd.f32 1.0, %v3603_v7  ;;  %v110_v56 = vld [vmem:[%s5462_s0 + $0x2c8] sm:$0xff] }
  0x55   :  { %v3607_v11 = vpop.eup %3606  ;;  %3632 = vrcp.f32 %v459_v8  ;;  %v457_v12 = vadd.f32 1.0, %v3605_v9  ;;  %v61_v8 = vld [vmem:[%s5462_s0 + $0x140] sm:$0xff] }
  0x56   :  { %v3609_v13 = vpop.eup %3608  ;;  %768 = vperm.xlu1 %3352, %v3587_v54   ;;  %3634 = vrcp.f32 %v458_v10  ;;  %v456_v14 = vadd.f32 1.0, %v3607_v11  ;;  %v3021_v10 = vmul.f32 -1.442695, %v77_v63  ;;  %v86_v11 = vld [vmem:[%s5462_s0 + $0x208] sm:$0xff] }
  0x57   :  { %v3611_v15 = vpop.eup %3610  ;;  %848 = vperm.xlu0 %3351, %v3589_v57   ;;  %3636 = vrcp.f32 %v457_v12  ;;  %v455_v16 = vadd.f32 1.0, %v3609_v13  ;;  %v85_v12 = vld [vmem:[%s5462_s0 + $0x200] sm:$0xff] }
  0x58   :  { %v3613_v17 = vpop.eup %3612  ;;  %3638 = vrcp.f32 %v456_v14  ;;  %v454_v18 = vadd.f32 1.0, %v3611_v15  ;;  %v3006_v14 = vmul.f32 -1.442695, %v62_v5 }
  0x59   :  { %v3615_v19 = vpop.eup %3614  ;;  %3640 = vrcp.f32 %v455_v16  ;;  %v453_v20 = vadd.f32 1.0, %v3613_v17  ;;  %v3005_v16 = vmul.f32 -1.442695, %v61_v8  ;;  %v3054_v8 = vmul.f32 -1.442695, %v110_v56 }
  0x5a   :  { %v3617_v21 = vpop.eup %3616  ;;  %838 = vperm.xlu1 %3352, %v3591_v60   ;;  %3642 = vrcp.f32 %v454_v18  ;;  %v444_v22 = vadd.f32 1.0, %v3615_v19  ;;  %v3030_v18 = vmul.f32 -1.442695, %v86_v11  ;;  %v58_v11 = vld [vmem:[%s5462_s0 + $0x128] sm:$0xff] }
  0x5b   :  { %v3619_v23 = vpop.eup %3618  ;;  %833 = vperm.xlu0 %3351, %v3593_v62   ;;  %3644 = vrcp.f32 %v453_v20  ;;  %v443_v24 = vadd.f32 1.0, %v3617_v21  ;;  %v78_v62 = vld [vmem:[%s5462_s0 + $0x1c8] sm:$0xff]  ;;  %v3029_v20 = vmul.f32 -1.442695, %v85_v12 }
  0x5c   :  { %v3621_v25 = vpop.eup %3620  ;;  %3646 = vrcp.f32 %v444_v22  ;;  %v428_v26 = vadd.f32 1.0, %v3619_v23  ;;  %v3022_v7 = vmul.f32 -1.442695, %v78_v62 }
  0x5d   :  { %v3623_v27 = vpop.eup %3622  ;;  %3648 = vrcp.f32 %v443_v24  ;;  %v427_v28 = vadd.f32 1.0, %v3621_v25 }
  0x5e   :  { %v3625_v30 = vpop.eup %3624  ;;  %828 = vperm.xlu1 %3352, %v3595_v1   ;;  %3650 = vrcp.f32 %v428_v26  ;;  %v452_v31 = vadd.f32 1.0, %v3623_v27 }
  0x5f   :  { %v3627_v33 = vpop.eup %3626  ;;  %823 = vperm.xlu0 %3351, %v3597_v3   ;;  %3652 = vrcp.f32 %v427_v28  ;;  %v451_v34 = vadd.f32 1.0, %v3625_v30 }
  0x60   :  { %v3629_v36 = vpop.eup %3628  ;;  %3654 = vrcp.f32 %v452_v31  ;;  %v442_v37 = vadd.f32 1.0, %v3627_v33  ;;  %v3358_v31 = vld [vmem:[%s5463_s2 + $0x154] ss:$24 sps:$4 sm:$0xff]  }
  0x61   :  { %v3631_v40 = vpop.eup %3630  ;;  %3656 = vrcp.f32 %v451_v34  ;;  %v441_v41 = vadd.f32 1.0, %v3629_v36  ;;  %1909 = vmatprep.mubr.bf16.mxu1 %v3358_v31 }
  0x62   :  { %v3633_v44 = vpop.eup %3632  ;;  %1138 = vperm.xlu1 %3352, %v3631_v40   ;;  %3658 = vrcp.f32 %v442_v37 }
  0x63   :  { %v3635_v47 = vpop.eup %3634  ;;  %1133 = vperm.xlu0 %3351, %v3633_v44   ;;  %3660 = vrcp.f32 %v441_v41  ;;  %v76_v44 = vld [vmem:[%s5462_s0 + $0x1b8] sm:$0xff] }
  0x64   :  { %v3637_v51 = vpop.eup %3636  ;;  %3662 = vpow2.f32 %v3010_v38  ;;  %v3020_v59 = vmul.f32 -1.442695, %v76_v44 }
  0x65   :  { %v3639_v54 = vpop.eup %3638  ;;  %3664 = vpow2.f32 %v3009_v42 }
  0x66   :  { %v3641_v57 = vpop.eup %3640  ;;  %1128 = vperm.xlu1 %3352, %v3635_v47   ;;  %3666 = vpow2.f32 %v3034_v45  ;;  %v75_v47 = vld [vmem:[%s5462_s0 + $0x1b0] sm:$0xff] }
  0x67   :  { %v3643_v60 = vpop.eup %3642  ;;  %1123 = vperm.xlu0 %3351, %v3637_v51   ;;  %3668 = vpow2.f32 %v3033_v48  ;;  %v3019_v63 = vmul.f32 -1.442695, %v75_v47 }
  0x68   :  { %v3645_v1 = vpop.eup %3644  ;;  %3670 = vpow2.f32 %v3024_v52 }
  0x69   :  { %v3647_v3 = vpop.eup %3646  ;;  %3672 = vpow2.f32 %v3023_v55 }
  0x6a   :  { %v3649_v6 = vpop.eup %3648  ;;  %1118 = vperm.xlu1 %3352, %v3639_v54   ;;  %3674 = vpow2.f32 %v3008_v58 }
  0x6b   :  { %v3651_v9 = vpop.eup %3650  ;;  %1113 = vperm.xlu0 %3351, %v3641_v57   ;;  %3676 = vpow2.f32 %v3007_v61 }
  0x6c   :  { %v3653_v13 = vpop.eup %3652  ;;  %3678 = vpow2.f32 %v3032_v2 }
  0x6d   :  { %v3655_v15 = vpop.eup %3654  ;;  %3680 = vpow2.f32 %v3031_v4  ;;  %v73_v4 = vld [vmem:[%s5462_s0 + $0x1a0] sm:$0xff] }
  0x6e   :  { %v3657_v17 = vpop.eup %3656  ;;  %1108 = vperm.xlu1 %3352, %v3643_v60   ;;  %3682 = vpow2.f32 %v3022_v7  ;;  %v109_v60 = vld [vmem:[%s5462_s0 + $0x2c0] sm:$0xff] }
  0x6f   :  { %v3659_v19 = vpop.eup %3658  ;;  %1103 = vperm.xlu0 %3351, %v3645_v1   ;;  %3684 = vpow2.f32 %v3021_v10  ;;  %v74_v1 = vld [vmem:[%s5462_s0 + $0x1a8] sm:$0xff]  ;;  %v3053_v10 = vmul.f32 -1.442695, %v109_v60 }
  0x70   :  { %v3661_v21 = vpop.eup %3660  ;;  %3686 = vpow2.f32 %v3006_v14  ;;  %v57_v14 = vld [vmem:[%s5462_s0 + $0x120] sm:$0xff] }
  0x71   :  { %v3663_v22 = vpop.eup %3662  ;;  %3688 = vpow2.f32 %v3005_v16  ;;  %v3017_v16 = vmul.f32 -1.442695, %v73_v4 }
  0x72   :  { %v3665_v23 = vpop.eup %3664  ;;  %1058 = vperm.xlu1 %3352, %v3647_v3   ;;  %v426_v24 = vadd.f32 1.0, %v3663_v22  ;;  %3690 = vpow2.f32 %v3030_v18  ;;  %v3004_v3 = vmul.f32 -1.442695, %v60_v50  ;;  %v3001_v22 = vmul.f32 -1.442695, %v57_v14 }
  0x73   :  { %v3667_v25 = vpop.eup %3666  ;;  %1053 = vperm.xlu0 %3351, %v3649_v6   ;;  %v425_v26 = vadd.f32 1.0, %v3665_v23  ;;  %3692 = vpow2.f32 %v3029_v20  ;;  %v3003_v6 = vmul.f32 -1.442695, %v59_v53  ;;  %v107_v20 = vld [vmem:[%s5462_s0 + $0x2b0] sm:$0xff]  ;;  %v72_v23 = vld [vmem:[%s5462_s0 + $0x198] sm:$0xff] }
  0x74   :  { %v3669_v27 = vpop.eup %3668  ;;  %3694 = vrcp.f32 %v426_v24  ;;  %v450_v28 = vadd.f32 1.0, %v3667_v25 }
  0x75   :  { %v3671_v29 = vpop.eup %3670  ;;  %3696 = vrcp.f32 %v425_v26  ;;  %v449_v30 = vadd.f32 1.0, %v3669_v27  ;;  %v71_v26 = vld [vmem:[%s5462_s0 + $0x190] sm:$0xff] }
  0x76   :  { %v3673_v32 = vpop.eup %3672  ;;  %978 = vperm.xlu1 %3352, %v3651_v9   ;;  %3698 = vrcp.f32 %v450_v28  ;;  %v440_v33 = vadd.f32 1.0, %v3671_v29  ;;  %v3051_v28 = vmul.f32 -1.442695, %v107_v20 }
  0x77   :  { %v3675_v34 = vpop.eup %3674  ;;  %973 = vperm.xlu0 %3351, %v3653_v13   ;;  %3700 = vrcp.f32 %v449_v30  ;;  %v439_v35 = vadd.f32 1.0, %v3673_v32  ;;  %v3018_v13 = vmul.f32 -1.442695, %v74_v1  ;;  %v3016_v30 = vmul.f32 -1.442695, %v72_v23 }
  0x78   :  { %v3677_v36 = vpop.eup %3676  ;;  %3702 = vrcp.f32 %v440_v33  ;;  %v424_v37 = vadd.f32 1.0, %v3675_v34  ;;  %v3015_v32 = vmul.f32 -1.442695, %v71_v26 }
  0x79   :  { %v3679_v38 = vpop.eup %3678  ;;  %3704 = vrcp.f32 %v439_v35  ;;  %v423_v39 = vadd.f32 1.0, %v3677_v36 }
  0x7a   :  { %v3681_v40 = vpop.eup %3680  ;;  %1098 = vperm.xlu1 %3352, %v3655_v15   ;;  %3706 = vrcp.f32 %v424_v37  ;;  %v448_v41 = vadd.f32 1.0, %v3679_v38  ;;  %v56_v37 = vld [vmem:[%s5462_s0 + $0x118] sm:$0xff] }
  0x7b   :  { %v3683_v42 = vpop.eup %3682  ;;  %1093 = vperm.xlu0 %3351, %v3657_v17   ;;  %3708 = vrcp.f32 %v423_v39  ;;  %v447_v43 = vadd.f32 1.0, %v3681_v40  ;;  %v108_v17 = vld [vmem:[%s5462_s0 + $0x2b8] sm:$0xff]  ;;  %v55_v40 = vld [vmem:[%s5462_s0 + $0x110] sm:$0xff] }
  0x7c   :  { %v3685_v45 = vpop.eup %3684  ;;  %3710 = vrcp.f32 %v448_v41  ;;  %v438_v46 = vadd.f32 1.0, %v3683_v42  ;;  %v3052_v25 = vmul.f32 -1.442695, %v108_v17 }
  0x7d   :  { %v3687_v48 = vpop.eup %3686  ;;  %3712 = vrcp.f32 %v447_v43  ;;  %v437_v49 = vadd.f32 1.0, %v3685_v45  ;;  %v3000_v45 = vmul.f32 -1.442695, %v56_v37  ;;  %v682_v37 = vld [vmem:[%s5464_s1 + $0xf8] sm:$0xff] }
  0x7e   :  { %v3689_v51 = vpop.eup %3688  ;;  %1048 = vperm.xlu1 %3352, %v3659_v19   ;;  %3714 = vrcp.f32 %v438_v46  ;;  %v422_v52 = vadd.f32 1.0, %v3687_v48  ;;  %v3002_v19 = vmul.f32 -1.442695, %v58_v11  ;;  %v2999_v48 = vmul.f32 -1.442695, %v55_v40  ;;  %v69_v11 = vld [vmem:[%s5462_s0 + $0x180] sm:$0xff] }
  0x7f   :  { %v3691_v54 = vpop.eup %3690  ;;  %1043 = vperm.xlu0 %3351, %v3661_v21   ;;  %3716 = vrcp.f32 %v437_v49  ;;  %v421_v55 = vadd.f32 1.0, %v3689_v51 }
  0x80   :  { %v3693_v57 = vpop.eup %3692  ;;  %3718 = vrcp.f32 %v422_v52  ;;  %v446_v58 = vadd.f32 1.0, %v3691_v54 }
  0x81   :  { %v3695_v61 = vpop.eup %3694  ;;  %3720 = vrcp.f32 %v421_v55  ;;  %v445_v62 = vadd.f32 1.0, %v3693_v57 }
  0x82   :  { %v3697_v2 = vpop.eup %3696  ;;  %968 = vperm.xlu1 %3352, %v3695_v61   ;;  %3722 = vrcp.f32 %v446_v58 }
  0x83   :  { %v3699_v5 = vpop.eup %3698  ;;  %963 = vperm.xlu0 %3351, %v3697_v2   ;;  %3724 = vrcp.f32 %v445_v62 }
  0x84   :  { %v3701_v7 = vpop.eup %3700  ;;  %3726 = vpow2.f32 %v3020_v59 }
  0x85   :  { %v3703_v9 = vpop.eup %3702  ;;  %3728 = vpow2.f32 %v3019_v63 }
  0x86   :  { %v3705_v12 = vpop.eup %3704  ;;  %1088 = vperm.xlu1 %3352, %v3699_v5   ;;  %3730 = vpow2.f32 %v3004_v3  ;;  %v106_v3 = vld [vmem:[%s5462_s0 + $0x2a8] sm:$0xff] }
  0x87   :  { %v3707_v15 = vpop.eup %3706  ;;  %1083 = vperm.xlu0 %3351, %v3701_v7   ;;  %3732 = vpow2.f32 %v3003_v6  ;;  %v105_v7 = vld [vmem:[%s5462_s0 + $0x2a0] sm:$0xff] }
  0x88   :  { %v3709_v18 = vpop.eup %3708  ;;  %3734 = vpow2.f32 %v3054_v8  ;;  %v3049_v14 = vmul.f32 -1.442695, %v105_v7 }
  0x89   :  { %v3711_v21 = vpop.eup %3710  ;;  %3736 = vpow2.f32 %v3053_v10  ;;  %v3050_v10 = vmul.f32 -1.442695, %v106_v3 }
  0x8a   :  { %v3713_v24 = vpop.eup %3712  ;;  %1038 = vperm.xlu1 %3352, %v3703_v9   ;;  %3738 = vpow2.f32 %v3018_v13  ;;  %v70_v9 = vld [vmem:[%s5462_s0 + $0x188] sm:$0xff] }
  0x8b   :  { %v3715_v27 = vpop.eup %3714  ;;  %1033 = vperm.xlu0 %3351, %v3705_v12   ;;  %3740 = vpow2.f32 %v3017_v16 }
  0x8c   :  { %v3717_v29 = vpop.eup %3716  ;;  %3742 = vpow2.f32 %v3002_v19  ;;  %v53_v19 = vld [vmem:[%s5462_s0 + $0x100] sm:$0xff] }
  0x8d   :  { %v3719_v31 = vpop.eup %3718  ;;  %3744 = vpow2.f32 %v3001_v22  ;;  %v104_v22 = vld [vmem:[%s5462_s0 + $0x298] sm:$0xff] }
  0x8e   :  { %v3721_v33 = vpop.eup %3720  ;;  %958 = vperm.xlu1 %3352, %v3707_v15   ;;  %3746 = vpow2.f32 %v3052_v25  ;;  %v54_v15 = vld [vmem:[%s5462_s0 + $0x108] sm:$0xff]  ;;  %v103_v25 = vld [vmem:[%s5462_s0 + $0x290] sm:$0xff] }
  0x8f   :  { %v3723_v34 = vpop.eup %3722  ;;  %953 = vperm.xlu0 %3351, %v3709_v18   ;;  %3748 = vpow2.f32 %v3051_v28  ;;  %v3014_v18 = vmul.f32 -1.442695, %v70_v9  ;;  %v2997_v28 = vmul.f32 -1.442695, %v53_v19 }
  0x90   :  { %v3725_v35 = vpop.eup %3724  ;;  %3750 = vpow2.f32 %v3016_v30 }
  0x91   :  { %v3727_v36 = vpop.eup %3726  ;;  %3752 = vpow2.f32 %v3015_v32 }
  0x92   :  { %v3729_v38 = vpop.eup %3728  ;;  %1078 = vperm.xlu1 %3352, %v3711_v21   ;;  %v436_v39 = vadd.f32 1.0, %v3727_v36  ;;  %v3013_v21 = vmul.f32 -1.442695, %v69_v11  ;;  %v681_v36 = vld [vmem:[%s5464_s1 + $0xf0] sm:$0xff] }
  0x93   :  { %v3731_v41 = vpop.eup %3730  ;;  %1073 = vperm.xlu0 %3351, %v3713_v24   ;;  %v435_v42 = vadd.f32 1.0, %v3729_v38  ;;  %v2998_v24 = vmul.f32 -1.442695, %v54_v15  ;;  %v663_v15 = vld [vmem:[%s5464_s1 + $0x60] sm:$0xff] }
  0x94   :  { %v3733_v43 = vpop.eup %3732  ;;  %3754 = vrcp.f32 %v436_v39  ;;  %v420_v44 = vadd.f32 1.0, %v3731_v41  ;;  %v101_v39 = vld [vmem:[%s5462_s0 + $0x280] sm:$0xff] }
  0x95   :  { %v3735_v46 = vpop.eup %3734  ;;  %3756 = vrcp.f32 %v435_v42  ;;  %v419_v47 = vadd.f32 1.0, %v3733_v43 }
  0x96   :  { %v3737_v49 = vpop.eup %3736  ;;  %1028 = vperm.xlu1 %3352, %v3715_v27   ;;  %3758 = vrcp.f32 %v420_v44  ;;  %v470_v50 = vadd.f32 1.0, %v3735_v46 }
  0x97   :  { %v3739_v51 = vpop.eup %3738  ;;  %1023 = vperm.xlu0 %3351, %v3717_v29   ;;  %3760 = vrcp.f32 %v419_v47  ;;  %v469_v52 = vadd.f32 1.0, %v3737_v49  ;;  %v3045_v49 = vmul.f32 -1.442695, %v101_v39 }
  0x98   :  { %v3741_v53 = vpop.eup %3740  ;;  %v434_v54 = vadd.f32 1.0, %v3739_v51  ;;  %3762 = vpow2.f32 %v3000_v45  ;;  %v665_v51 = vld [vmem:[%s5464_s1 + $0x70] sm:$0xff] }
  0x99   :  { %v3743_v55 = vpop.eup %3742  ;;  %v433_v56 = vadd.f32 1.0, %v3741_v53  ;;  %3764 = vpow2.f32 %v2999_v48 }
  0x9a   :  { %v3745_v57 = vpop.eup %3744  ;;  %948 = vperm.xlu1 %3352, %v3719_v31   ;;  %3766 = vrcp.f32 %v470_v50  ;;  %v418_v58 = vadd.f32 1.0, %v3743_v55  ;;  %v3048_v31 = vmul.f32 -1.442695, %v104_v22 }
  0x9b   :  { %v3747_v59 = vpop.eup %3746  ;;  %943 = vperm.xlu0 %3351, %v3721_v33   ;;  %3768 = vrcp.f32 %v469_v52  ;;  %v417_v60 = vadd.f32 1.0, %v3745_v57  ;;  %v3047_v33 = vmul.f32 -1.442695, %v103_v25  ;;  %v666_v52 = vld [vmem:[%s5464_s1 + $0x78] sm:$0xff] }
  0x9c   :  { %v3749_v61 = vpop.eup %3748  ;;  %3770 = vrcp.f32 %v434_v54  ;;  %v468_v62 = vadd.f32 1.0, %v3747_v59 }
  0x9d   :  { %v3751_v63 = vpop.eup %3750  ;;  %v4161_v1 = vpop.permute.xlu1 %753  ;;  %3772 = vrcp.f32 %v433_v56  ;;  %v467_v2 = vadd.f32 1.0, %v3749_v61 }
  0x9e   :  { %v3753_v4 = vpop.eup %3752  ;;  %v4166_v5 = vpop.permute.xlu0 %743  ;;  %1068 = vperm.xlu1 %3352, %v3723_v34   ;;  %3774 = vrcp.f32 %v418_v58  ;;  %v432_v6 = vadd.f32 1.0, %v3751_v63  ;;  %v102_v34 = vld [vmem:[%s5462_s0 + $0x288] sm:$0xff] }
  0x9f   :  { %1063 = vperm.xlu0 %3351, %v3725_v35   ;;  %3776 = vrcp.f32 %v417_v60  ;;  %v431_v8 = vadd.f32 1.0, %v3753_v4  ;;  %v3046_v45 = vmul.f32 -1.442695, %v102_v34  ;;  %v680_v63 = vld [vmem:[%s5464_s1 + $0xe8] sm:$0xff] }
  0xa0   :  { %3778 = vrcp.f32 %v468_v62  ;;  %v679_v62 = vld [vmem:[%s5464_s1 + $0xe0] sm:$0xff] }
  0xa1   :  { %v3755_v12 = vpop.eup %3754  ;;  %v4177_v13 = vpop.permute.xlu1 %758  ;;  %3780 = vrcp.f32 %v467_v2 }
  0xa2   :  { %v3757_v16 = vpop.eup %3756  ;;  %v4182_v17 = vpop.permute.xlu0 %748  ;;  %1018 = vperm.xlu1 %3352, %v3755_v12   ;;  %3782 = vrcp.f32 %v432_v6 }
  0xa3   :  { %v3759_v20 = vpop.eup %3758  ;;  %1013 = vperm.xlu0 %3351, %v3757_v16   ;;  %3784 = vrcp.f32 %v431_v8  ;;  %v664_v16 = vld [vmem:[%s5464_s1 + $0x68] sm:$0xff] }
  0xa4   :  { %v3761_v23 = vpop.eup %3760  ;;  %3786 = vpow2.f32 %v3050_v10 }
  0xa5   :  { %v3763_v26 = vpop.eup %3762  ;;  %v894_v27 = vpop.permute.xlu1 %893  ;;  %3788 = vpow2.f32 %v3049_v14 }
  0xa6   :  { %v3765_v29 = vpop.eup %3764  ;;  %v4193_v30 = vpop.permute.xlu0 %763  ;;  %938 = vperm.xlu1 %3352, %v3759_v20   ;;  %3790 = vpow2.f32 %v3014_v18  ;;  %v416_v38 = vadd.f32 1.0, %v3763_v26  ;;  %v1221_v47 = vmul.f32 %v894_v27, %v681_v36 }
  0xa7   :  { %v3767_v32 = vpop.eup %3766  ;;  %933 = vperm.xlu0 %3351, %v3761_v23   ;;  %3792 = vpow2.f32 %v3013_v21  ;;  %v415_v42 = vadd.f32 1.0, %v3765_v29 }
  0xa8   :  { %v3769_v35 = vpop.eup %3768  ;;  %3794 = vpow2.f32 %v2998_v24 }
  0xa9   :  { %v3771_v40 = vpop.eup %3770  ;;  %v814_v41 = vpop.permute.xlu1 %813  ;;  %3796 = vpow2.f32 %v2997_v28 }
  0xaa   :  { %v3773_v43 = vpop.eup %3772  ;;  %v899_v44 = vpop.permute.xlu0 %898  ;;  %1188 = vperm.xlu1 %3352, %v3767_v32   ;;  %3798 = vpow2.f32 %v3048_v31  ;;  %v1205_v59 = vmul.f32 %v814_v41, %v665_v51  ;;  %v677_v32 = vld [vmem:[%s5464_s1 + $0xd0] sm:$0xff] }
  0xab   :  { %v3775_v46 = vpop.eup %3774  ;;  %v1222_v48 = vmul.f32 %v899_v44, %v682_v37  ;;  %1183 = vperm.xlu0 %3351, %v3769_v35   ;;  %3800 = vpow2.f32 %v3047_v33  ;;  %v678_v33 = vld [vmem:[%s5464_s1 + $0xd8] sm:$0xff] }
  0xac   :  { %v3777_v50 = vpop.eup %3776  ;;  %3802 = vrcp.f32 %v416_v38 }
  0xad   :  { %v3779_v53 = vpop.eup %3778  ;;  %v884_v54 = vpop.permute.xlu1 %883  ;;  %v1296_v55 = vpack.c.bf16 %v1222_v48, %v1221_v47  ;;  %3804 = vrcp.f32 %v415_v42 }
  0xae   :  { %v3781_v56 = vpop.eup %3780  ;;  %v819_v57 = vpop.permute.xlu0 %818  ;;  %1008 = vperm.xlu1 %3352, %v3771_v40   ;;  %3806 = vpow2.f32 %v3046_v45  ;;  %v1219_v10 = vmul.f32 %v884_v54, %v679_v62  ;;  %v661_v45 = vld [vmem:[%s5464_s1 + $0x50] sm:$0xff]  ;;  %v675_v54 = vld [vmem:[%s5464_s1 + $0xc0] sm:$0xff] }
  0xaf   :  { %v3783_v58 = vpop.eup %3782  ;;  %v1206_v60 = vmul.f32 %v819_v57, %v666_v52  ;;  %1003 = vperm.xlu0 %3351, %v3773_v43   ;;  %3146 = vmatprep.subr.bf16.mxu0 %v1296_v55  ;;  %3808 = vpow2.f32 %v3045_v49 }
  0xb0   :  { %v3785_v61 = vpop.eup %3784  ;;  %3334 = vmatprep.subr.bf16.mxu1 %v1296_v55  ;;  %v676_v55 = vld [vmem:[%s5464_s1 + $0xc8] sm:$0xff] }
  0xb1   :  { %v3787_v2 = vpop.eup %3786  ;;  %v804_v3 = vpop.permute.xlu1 %803  ;;  %v1288_v4 = vpack.c.bf16 %v1206_v60, %v1205_v59 }
  0xb2   :  { %v3789_v6 = vpop.eup %3788  ;;  %v889_v7 = vpop.permute.xlu0 %888  ;;  %928 = vperm.xlu1 %3352, %v3775_v46   ;;  %v466_v8 = vadd.f32 1.0, %v3787_v2  ;;  %v1203_v27 = vmul.f32 %v804_v3, %v663_v15  ;;  %v662_v46 = vld [vmem:[%s5464_s1 + $0x58] sm:$0xff]  ;;  %v659_v3 = vld [vmem:[%s5464_s1 + $0x40] sm:$0xff] }
  0xb3   :  { %v3791_v9 = vpop.eup %3790  ;;  %v1220_v11 = vmul.f32 %v889_v7, %v680_v63  ;;  %923 = vperm.xlu0 %3351, %v3777_v50   ;;  %3147 = vmatpush3.bf16.msra.mxu0 %v1288_v4  ;;  %v465_v12 = vadd.f32 1.0, %v3789_v6  ;;  %v674_v15 = vld [vmem:[%s5464_s1 + $0xb8] sm:$0xff] }
  0xb4   :  { %v3793_v14 = vpop.eup %3792  ;;  %3342 = vmatpush3.bf16.msra.mxu1 %v1288_v4  ;;  %3810 = vrcp.f32 %v466_v8  ;;  %v430_v18 = vadd.f32 1.0, %v3791_v9  ;;  %v660_v4 = vld [vmem:[%s5464_s1 + $0x48] sm:$0xff] }
  0xb5   :  { %v3795_v19 = vpop.eup %3794  ;;  %v1295_v20 = vpack.c.bf16 %v1220_v11, %v1219_v10  ;;  %v874_v21 = vpop.permute.xlu1 %873  ;;  %3812 = vrcp.f32 %v465_v12  ;;  %v429_v22 = vadd.f32 1.0, %v3793_v14  ;;  %v673_v14 = vld [vmem:[%s5464_s1 + $0xb0] sm:$0xff] }
  0xb6   :  { %v3797_v23 = vpop.eup %3796  ;;  %v809_v24 = vpop.permute.xlu0 %808  ;;  %1178 = vperm.xlu1 %3352, %v3779_v53   ;;  %3814 = vrcp.f32 %v430_v18  ;;  %v414_v25 = vadd.f32 1.0, %v3795_v19  ;;  %v1217_v41 = vmul.f32 %v874_v21, %v677_v32 }
  0xb7   :  { %v3799_v26 = vpop.eup %3798  ;;  %v1204_v28 = vmul.f32 %v809_v24, %v664_v16  ;;  %1173 = vperm.xlu0 %3351, %v3781_v56   ;;  %3148 = vmatprep.subr.bf16.mxu0 %v1295_v20  ;;  %3816 = vrcp.f32 %v429_v22  ;;  %v413_v29 = vadd.f32 1.0, %v3797_v23  ;;  %v657_v24 = vld [vmem:[%s5464_s1 + $0x30] sm:$0xff] }
  0xb8   :  { %v3801_v31 = vpop.eup %3800  ;;  %3335 = vmatprep.subr.bf16.mxu1 %v1295_v20  ;;  %3818 = vrcp.f32 %v414_v25  ;;  %v464_v39 = vadd.f32 1.0, %v3799_v26  ;;  %v658_v25 = vld [vmem:[%s5464_s1 + $0x38] sm:$0xff] }
  0xb9   :  { %v3803_v34 = vpop.eup %3802  ;;  %v1287_v35 = vpack.c.bf16 %v1204_v28, %v1203_v27  ;;  %v794_v36 = vpop.permute.xlu1 %793  ;;  %3820 = vrcp.f32 %v413_v29  ;;  %v463_v43 = vadd.f32 1.0, %v3801_v31  ;;  %v655_v31 = vld [vmem:[%s5464_s1 + $0x20] sm:$0xff] }
  0xba   :  { %v3805_v37 = vpop.eup %3804  ;;  %v879_v38 = vpop.permute.xlu0 %878  ;;  %998 = vperm.xlu1 %3352, %v3783_v58   ;;  %3822 = vrcp.f32 %v464_v39  ;;  %v1201_v51 = vmul.f32 %v794_v36, %v661_v45  ;;  %v671_v36 = vld [vmem:[%s5464_s1 + $0xa0] sm:$0xff] }
  0xbb   :  { %v3807_v40 = vpop.eup %3806  ;;  %v1218_v42 = vmul.f32 %v879_v38, %v678_v33  ;;  %993 = vperm.xlu0 %3351, %v3785_v61   ;;  %3149 = vmatpush3.bf16.msra.mxu0 %v1287_v35  ;;  %3824 = vrcp.f32 %v463_v43  ;;  %v654_v43 = vld [vmem:[%s5464_s1 + $0x18] sm:$0xff] }
  0xbc   :  { %v3809_v44 = vpop.eup %3808  ;;  %3343 = vmatpush3.bf16.msra.mxu1 %v1287_v35  ;;  %v462_v50 = vadd.f32 1.0, %v3807_v40  ;;  %v1195_v40 = vmul.f32 %v4193_v30, %v655_v31  ;;  %v3362_v31 = vld [vmem:[%s5463_s2 + $0x184] ss:$24 sps:$4 sm:$0xff]  }
  0xbd   :  { %v1294_v47 = vpack.c.bf16 %v1218_v42, %v1217_v41  ;;  %v864_v48 = vpop.permute.xlu1 %863  ;;  %v461_v53 = vadd.f32 1.0, %v3809_v44 }
  0xbe   :  { %v799_v49 = vpop.permute.xlu0 %798  ;;  %918 = vperm.xlu1 %3352, %v3803_v34   ;;  %3826 = vrcp.f32 %v462_v50  ;;  %v1215_v62 = vmul.f32 %v864_v48, %v675_v54  ;;  %v656_v34 = vld [vmem:[%s5464_s1 + $0x28] sm:$0xff]  ;;  %v669_v48 = vld [vmem:[%s5464_s1 + $0x90] sm:$0xff] }
  0xbf   :  { %v1202_v52 = vmul.f32 %v799_v49, %v662_v46  ;;  %913 = vperm.xlu0 %3351, %v3805_v37   ;;  %3150 = vmatprep.subr.bf16.mxu0 %v1294_v47  ;;  %3828 = vrcp.f32 %v461_v53  ;;  %v672_v37 = vld [vmem:[%s5464_s1 + $0xa8] sm:$0xff]  ;;  %v670_v46 = vld [vmem:[%s5464_s1 + $0x98] sm:$0xff]  ;;  %v2753_v49 = vld [vmem:[%s5465_s4] sm:$0xff]  ;;  %v1194_v53 = vmul.f32 %v4177_v13, %v654_v43 }
  0xc0   :  { %3336 = vmatprep.subr.bf16.mxu1 %v1294_v47  ;;  %v2754_v47 = vld [vmem:[%s5465_s4 + $0x8] sm:$0xff]  ;;  %v653_v50 = vld [vmem:[%s5464_s1 + $0x10] sm:$0xff]  ;;  %v2764_v43 = vld [vmem:[%s5465_s4 + $0x58] sm:$0xff] }
  0xc1   :  { %v3811_v56 = vpop.eup %3810  ;;  %v1286_v57 = vpack.c.bf16 %v1202_v52, %v1201_v51  ;;  %v784_v58 = vpop.permute.xlu1 %783  ;;  %v1193_v13 = vmul.f32 %v4161_v1, %v653_v50 }
  0xc2   :  { %v3813_v59 = vpop.eup %3812  ;;  %v869_v60 = vpop.permute.xlu0 %868  ;;  %1168 = vperm.xlu1 %3352, %v3811_v56   ;;  %v1199_v10 = vmul.f32 %v784_v58, %v659_v3  ;;  %v652_v56 = vld [vmem:[%s5464_s1 + $0x8] sm:$0xff] }
  0xc3   :  { %v3815_v61 = vpop.eup %3814  ;;  %v1216_v63 = vmul.f32 %v869_v60, %v676_v55  ;;  %1163 = vperm.xlu0 %3351, %v3813_v59   ;;  %3151 = vmatpush3.bf16.msra.mxu0 %v1286_v57  ;;  %v668_v58 = vld [vmem:[%s5464_s1 + $0x88] sm:$0xff]  ;;  %v2756_v59 = vld [vmem:[%s5465_s4 + $0x18] sm:$0xff]  ;;  %v667_v60 = vld [vmem:[%s5464_s1 + $0x80] sm:$0xff]  ;;  %v1282_v3 = vpack.c.bf16 %v1194_v53, %v1193_v13  ;;  %v1192_v1 = vmul.f32 %v4182_v17, %v652_v56 }
  0xc4   :  { %v3817_v2 = vpop.eup %3816  ;;  %3344 = vmatpush3.bf16.msra.mxu1 %v1286_v57  ;;  %v729_v17 = vld [vmem:[%s5464_s1 + $0x270] sm:$0xff] }
  0xc5   :  { %v1293_v6 = vpack.c.bf16 %v1216_v63, %v1215_v62  ;;  %v854_v7 = vpop.permute.xlu1 %853  ;;  %v3819_v9 = vpop.eup %3818  ;;  %v651_v62 = vld [vmem:[%s5464_s1] sm:$0xff]  ;;  %v713_v56 = vld [vmem:[%s5464_s1 + $0x1f0] sm:$0xff] }
  0xc6   :  { %v789_v8 = vpop.permute.xlu0 %788  ;;  %988 = vperm.xlu1 %3352, %v3815_v61   ;;  %v3821_v12 = vpop.eup %3820  ;;  %v1213_v21 = vmul.f32 %v854_v7, %v673_v14  ;;  %v2755_v61 = vld [vmem:[%s5465_s4 + $0x10] sm:$0xff] }
  0xc7   :  { %v1200_v11 = vmul.f32 %v789_v8, %v660_v4  ;;  %983 = vperm.xlu0 %3351, %v3817_v2   ;;  %3152 = vmatprep.subr.bf16.mxu0 %v1293_v6  ;;  %v3823_v20 = vpop.eup %3822  ;;  %v730_v8 = vld [vmem:[%s5464_s1 + $0x278] sm:$0xff] }
  0xc8   :  { %3337 = vmatprep.subr.bf16.mxu1 %v1293_v6  ;;  %v3825_v23 = vpop.eup %3824 }
  0xc9   :  { %v1285_v16 = vpack.c.bf16 %v1200_v11, %v1199_v10  ;;  %v774_v18 = vpop.permute.xlu1 %773  ;;  %v1191_v10 = vmul.f32 %v4166_v5, %v651_v62  ;;  %v2757_v11 = vld [vmem:[%s5465_s4 + $0x20] sm:$0xff]  ;;  %v728_v5 = vld [vmem:[%s5464_s1 + $0x268] sm:$0xff]  ;;  %v698_v62 = vld [vmem:[%s5464_s1 + $0x178] sm:$0xff] }
  0xca   :  { %v859_v19 = vpop.permute.xlu0 %858  ;;  %908 = vperm.xlu1 %3352, %v3819_v9   ;;  %v1197_v32 = vmul.f32 %v774_v18, %v657_v24  ;;  %v2758_v9 = vld [vmem:[%s5465_s4 + $0x28] sm:$0xff] }
  0xcb   :  { %v1214_v22 = vmul.f32 %v859_v19, %v674_v15  ;;  %903 = vperm.xlu0 %3351, %v3821_v12   ;;  %3153 = vmatpush3.bf16.msra.mxu0 %v1285_v16  ;;  %v3827_v29 = vpop.eup %3826  ;;  %v1281_v15 = vpack.c.bf16 %v1192_v1, %v1191_v10  ;;  %v3356_v24 = vld [vmem:[%s5463_s2 + $0x150] ss:$24 sps:$4 sm:$0xff]   ;;  %v3371_v1 = vld [vmem:[%s5463_s2 + $0x94] ss:$24 sps:$4 sm:$0xff]  }
  0xcc   :  { %3345 = vmatpush3.bf16.msra.mxu1 %v1285_v16  ;;  %v3829_v35 = vpop.eup %3828 }
  0xcd   :  { %v1292_v26 = vpack.c.bf16 %v1214_v22, %v1213_v21  ;;  %v844_v27 = vpop.permute.xlu1 %843  ;;  %v2760_v21 = vld [vmem:[%s5465_s4 + $0x38] sm:$0xff]  ;;  %v727_v22 = vld [vmem:[%s5464_s1 + $0x260] sm:$0xff] }
  0xce   :  { %v779_v28 = vpop.permute.xlu0 %778  ;;  %1158 = vperm.xlu1 %3352, %v3823_v20   ;;  %v1211_v44 = vmul.f32 %v844_v27, %v671_v36  ;;  %v3353_v20 = vld [vmem:[%s5463_s2] ss:$24 sps:$4 sm:$0xff]   ;;  %v3359_v27 = vld [vmem:[%s5463_s2 + $0x34] ss:$24 sps:$4 sm:$0xff]  }
  0xcf   :  { %v1198_v33 = vmul.f32 %v779_v28, %v658_v25  ;;  %1153 = vperm.xlu0 %3351, %v3825_v23   ;;  %3154 = vmatprep.subr.bf16.mxu0 %v1292_v26  ;;  %v2759_v23 = vld [vmem:[%s5465_s4 + $0x30] sm:$0xff]  ;;  %v2761_v36 = vld [vmem:[%s5465_s4 + $0x40] sm:$0xff] }
  0xd0   :  { %3338 = vmatprep.subr.bf16.mxu1 %v1292_v26 }
  0xd1   :  { %v1284_v38 = vpack.c.bf16 %v1198_v33, %v1197_v32  ;;  %v769_v39 = vpop.permute.xlu1 %768  ;;  %v726_v33 = vld [vmem:[%s5464_s1 + $0x258] sm:$0xff] }
  0xd2   :  { %v1196_v41 = vmul.f32 %v769_v39, %v656_v34  ;;  %v849_v42 = vpop.permute.xlu0 %848  ;;  %1148 = vperm.xlu1 %3352, %v3827_v29   ;;  %v2762_v34 = vld [vmem:[%s5465_s4 + $0x48] sm:$0xff] }
  0xd3   :  { %v1212_v45 = vmul.f32 %v849_v42, %v672_v37  ;;  %1143 = vperm.xlu0 %3351, %v3829_v35   ;;  %3155 = vmatpush3.bf16.msra.mxu0 %v1284_v38  ;;  %v725_v35 = vld [vmem:[%s5464_s1 + $0x250] sm:$0xff]  ;;  %v724_v42 = vld [vmem:[%s5464_s1 + $0x248] sm:$0xff] }
  0xd4   :  { %v1283_v30 = vpack.c.bf16 %v1196_v41, %v1195_v40  ;;  %3346 = vmatpush3.bf16.msra.mxu1 %v1284_v38 }
  0xd5   :  { %v1291_v51 = vpack.c.bf16 %v1212_v45, %v1211_v44  ;;  %v839_v52 = vpop.permute.xlu1 %838  ;;  %v3361_v44 = vld [vmem:[%s5463_s2 + $0x30] ss:$24 sps:$4 sm:$0xff]   ;;  %v723_v45 = vld [vmem:[%s5464_s1 + $0x240] sm:$0xff] }
  0xd6   :  { %v1210_v54 = vmul.f32 %v839_v52, %v670_v46  ;;  %v834_v55 = vpop.permute.xlu0 %833  ;;  %2786 = vperm.xlu1 %3352, %v2754_v47   ;;  %v2763_v46 = vld [vmem:[%s5465_s4 + $0x50] sm:$0xff]  ;;  %v3364_v47 = vld [vmem:[%s5463_s2 + $0x180] ss:$24 sps:$4 sm:$0xff]  }
  0xd7   :  { %v1209_v57 = vmul.f32 %v834_v55, %v669_v48  ;;  %2781 = vperm.xlu0 %3351, %v2753_v49   ;;  %3156 = vmatprep.subr.bf16.mxu0 %v1291_v51  ;;  %v3365_v49 = vld [vmem:[%s5463_s2 + $0x64] ss:$24 sps:$4 sm:$0xff]   ;;  %v3368_v52 = vld [vmem:[%s5463_s2 + $0x1b4] ss:$24 sps:$4 sm:$0xff]  }
  0xd8   :  { %3339 = vmatprep.subr.bf16.mxu1 %v1291_v51  ;;  %3157 = vmatpush3.bf16.msra.mxu0 %v1283_v30  ;;  %v2766_v55 = vld [vmem:[%s5465_s4 + $0x68] sm:$0xff] }
  0xd9   :  { %v1290_v63 = vpack.c.bf16 %v1210_v54, %v1209_v57  ;;  %3347 = vmatpush3.bf16.msra.mxu1 %v1283_v30  ;;  %v829_v2 = vpop.permute.xlu1 %828  ;;  %v714_v54 = vld [vmem:[%s5464_s1 + $0x1f8] sm:$0xff]  ;;  %v2765_v57 = vld [vmem:[%s5465_s4 + $0x60] sm:$0xff] }
  0xda   :  { %v1208_v4 = vmul.f32 %v829_v2, %v668_v58  ;;  %v824_v6 = vpop.permute.xlu0 %823  ;;  %2796 = vperm.xlu1 %3352, %v2756_v59   ;;  %v697_v2 = vld [vmem:[%s5464_s1 + $0x170] sm:$0xff] }
  0xdb   :  { %v1207_v7 = vmul.f32 %v824_v6, %v667_v60  ;;  %2791 = vperm.xlu0 %3351, %v2755_v61   ;;  %3158 = vmatprep.subr.bf16.mxu0 %v1290_v63 }
  0xdc   :  { %3340 = vmatprep.subr.bf16.mxu1 %v1290_v63  ;;  %3159 = vmatpush3.bf16.msra.mxu0 %v1282_v3  ;;  %v3367_v63 = vld [vmem:[%s5463_s2 + $0x60] ss:$24 sps:$4 sm:$0xff]  }
  0xdd   :  { %v1289_v12 = vpack.c.bf16 %v1208_v4, %v1207_v7  ;;  %3348 = vmatpush3.bf16.msra.mxu1 %v1282_v3  ;;  %v1139_v14 = vpop.permute.xlu1 %1138  ;;  %v3370_v3 = vld [vmem:[%s5463_s2 + $0x1b0] ss:$24 sps:$4 sm:$0xff]   ;;  %v3374_v7 = vld [vmem:[%s5463_s2 + $0x1e4] ss:$24 sps:$4 sm:$0xff]  }
  0xde   :  { %v1270_v16 = vmul.f32 %v1139_v14, %v730_v8  ;;  %v1134_v18 = vpop.permute.xlu0 %1133  ;;  %2806 = vperm.xlu1 %3352, %v2758_v9  }
  0xdf   :  { %v1269_v19 = vmul.f32 %v1134_v18, %v729_v17  ;;  %2801 = vperm.xlu0 %3351, %v2757_v11   ;;  %3160 = vmatprep.subr.bf16.mxu0 %v1289_v12  ;;  %v722_v17 = vld [vmem:[%s5464_s1 + $0x238] sm:$0xff]  ;;  %v721_v11 = vld [vmem:[%s5464_s1 + $0x230] sm:$0xff] }
  0xe0   :  { %3341 = vmatprep.subr.bf16.mxu1 %v1289_v12  ;;  %3161 = vmatpush3.bf16.msra.mxu0 %v1281_v15 }
  0xe1   :  { %v1320_v25 = vpack.c.bf16 %v1270_v16, %v1269_v19  ;;  %3349 = vmatpush3.bf16.msra.mxu1 %v1281_v15  ;;  %v1129_v26 = vpop.permute.xlu1 %1128  ;;  %2095 = vmatprep.subr.bf16.mxu0 %v3882_v0  ;;  %v712_v19 = vld [vmem:[%s5464_s1 + $0x1e8] sm:$0xff] }
  0xe2   :  { %v1268_v28 = vmul.f32 %v1129_v26, %v728_v5  ;;  %v1124_v29 = vpop.permute.xlu0 %1123  ;;  %2816 = vperm.xlu1 %3352, %v2760_v21   ;;  %v711_v5 = vld [vmem:[%s5464_s1 + $0x1e0] sm:$0xff] }
  0xe3   :  { %v1267_v32 = vmul.f32 %v1124_v29, %v727_v22  ;;  %2811 = vperm.xlu0 %3351, %v2759_v23   ;;  %1854 = vmatmul.mubr.bf16.vlgmr.msra.gmra.mxu0 %v3353_v20  ;;  %v3373_v20 = vld [vmem:[%s5463_s2 + $0x90] ss:$24 sps:$4 sm:$0xff]   ;;  %v3376_v23 = vld [vmem:[%s5463_s2 + $0x1e0] ss:$24 sps:$4 sm:$0xff]  }
  0xe4   :  { %2096 = vmatpush1.bf16.msra.mxu0 %v1320_v25  ;;  %1910 = vmatmul.mubr.bf16.vlgmr.msra.gmra.mxu1 %v3356_v24  ;;  %v3377_v24 = vld [vmem:[%s5463_s2 + $0xc4] ss:$24 sps:$4 sm:$0xff]   ;;  %v696_v29 = vld [vmem:[%s5464_s1 + $0x168] sm:$0xff] }
  0xe5   :  { %v1319_v37 = vpack.c.bf16 %v1268_v28, %v1267_v32  ;;  %v1119_v38 = vpop.permute.xlu1 %1118  ;;  %2097 = vmatprep.subr.bf16.mxu0 %v3882_v0  ;;  %1861 = vmatprep.mubr.bf16.mxu0 %v3359_v27  ;;  %v3380_v27 = vld [vmem:[%s5463_s2 + $0x214] ss:$24 sps:$4 sm:$0xff]  }
  0xe6   :  { %v1266_v39 = vmul.f32 %v1119_v38, %v726_v33  ;;  %v1114_v40 = vpop.permute.xlu0 %1113  ;;  %2826 = vperm.xlu1 %3352, %v2762_v34   ;;  %1917 = vmatprep.mubr.bf16.mxu1 %v3362_v31  ;;  %v695_v31 = vld [vmem:[%s5464_s1 + $0x160] sm:$0xff] }
  0xe7   :  { %v1265_v41 = vmul.f32 %v1114_v40, %v725_v35  ;;  %2821 = vperm.xlu0 %3351, %v2761_v36   ;;  %v719_v38 = vld [vmem:[%s5464_s1 + $0x220] sm:$0xff] }
  0xe8   :  { %2098 = vmatpush1.bf16.msra.mxu0 %v1319_v37  ;;  %v720_v37 = vld [vmem:[%s5464_s1 + $0x228] sm:$0xff] }
  0xe9   :  { %v1318_v30 = vpack.c.bf16 %v1266_v39, %v1265_v41  ;;  %v1109_v48 = vpop.permute.xlu1 %1108  ;;  %2099 = vmatprep.subr.bf16.mxu0 %v3882_v0  ;;  %v3379_v39 = vld [vmem:[%s5463_s2 + $0xc0] ss:$24 sps:$4 sm:$0xff]  }
  0xea   :  { %v1264_v50 = vmul.f32 %v1109_v48, %v724_v42  ;;  %v1104_v51 = vpop.permute.xlu0 %1103  ;;  %2836 = vperm.xlu1 %3352, %v2764_v43   ;;  %v3382_v42 = vld [vmem:[%s5463_s2 + $0x210] ss:$24 sps:$4 sm:$0xff]   ;;  %v3383_v43 = vld [vmem:[%s5463_s2 + $0xf4] ss:$24 sps:$4 sm:$0xff]  }
  0xeb   :  { %v1263_v53 = vmul.f32 %v1104_v51, %v723_v45  ;;  %2831 = vperm.xlu0 %3351, %v2763_v46   ;;  %1862 = vmatmul.mubr.bf16.gmra.mxu0 %v3361_v44  ;;  %v3386_v46 = vld [vmem:[%s5463_s2 + $0x244] ss:$24 sps:$4 sm:$0xff]   ;;  %v709_v48 = vld [vmem:[%s5464_s1 + $0x1d0] sm:$0xff] }
  0xec   :  { %2100 = vmatpush1.bf16.msra.mxu0 %v1318_v30  ;;  %1918 = vmatmul.mubr.bf16.gmra.mxu1 %v3364_v47  ;;  %v710_v30 = vld [vmem:[%s5464_s1 + $0x1d8] sm:$0xff] }
  0xed   :  { %v1317_v58 = vpack.c.bf16 %v1264_v50, %v1263_v53  ;;  %v1059_v59 = vpop.permute.xlu1 %1058  ;;  %2101 = vmatprep.subr.bf16.mxu0 %v3882_v0  ;;  %1869 = vmatprep.mubr.bf16.mxu0 %v3365_v49 }
  0xee   :  { %v1254_v13 = vmul.f32 %v1059_v59, %v714_v54  ;;  %v1054_v60 = vpop.permute.xlu0 %1053  ;;  %2846 = vperm.xlu1 %3352, %v2766_v55   ;;  %1925 = vmatprep.mubr.bf16.mxu1 %v3368_v52  ;;  %v694_v54 = vld [vmem:[%s5464_s1 + $0x158] sm:$0xff]  ;;  %v693_v55 = vld [vmem:[%s5464_s1 + $0x150] sm:$0xff] }
  0xef   :  { %v1253_v61 = vmul.f32 %v1054_v60, %v713_v56  ;;  %2841 = vperm.xlu0 %3351, %v2765_v57   ;;  %v3385_v56 = vld [vmem:[%s5463_s2 + $0xf0] ss:$24 sps:$4 sm:$0xff]   ;;  %v3388_v59 = vld [vmem:[%s5463_s2 + $0x240] ss:$24 sps:$4 sm:$0xff]  }
  0xf0   :  { %2102 = vmatpush1.bf16.msra.mxu0 %v1317_v58 }
  0xf1   :  { %v1312_v4 = vpack.c.bf16 %v1254_v13, %v1253_v61  ;;  %v979_v6 = vpop.permute.xlu1 %978  ;;  %2103 = vmatprep.subr.bf16.mxu0 %v3882_v0  ;;  %v3389_v13 = vld [vmem:[%s5463_s2 + $0x124] ss:$24 sps:$4 sm:$0xff]  }
  0xf2   :  { %v1238_v8 = vmul.f32 %v979_v6, %v698_v62  ;;  %v974_v9 = vpop.permute.xlu0 %973  ;;  %v3394_v62 = vld [vmem:[%s5463_s2 + $0xc] ss:$24 sps:$4 sm:$0xff]  }
  0xf3   :  { %v1237_v10 = vmul.f32 %v974_v9, %v697_v2  ;;  %3240 = vmatprep.subr.bf16.mxu1 %v1312_v4  ;;  %1870 = vmatmul.mubr.bf16.gmra.mxu0 %v3367_v63  ;;  %v718_v2 = vld [vmem:[%s5464_s1 + $0x218] sm:$0xff]  ;;  %v708_v9 = vld [vmem:[%s5464_s1 + $0x1c8] sm:$0xff] }
  0xf4   :  { %1926 = vmatmul.mubr.bf16.gmra.mxu1 %v3370_v3  ;;  %1877 = vmatprep.mubr.bf16.mxu0 %v3371_v1  ;;  %v717_v3 = vld [vmem:[%s5464_s1 + $0x210] sm:$0xff] }
  0xf5   :  { %v1304_v12 = vpack.c.bf16 %v1238_v8, %v1237_v10  ;;  %v1099_v14 = vpop.permute.xlu1 %1098  ;;  %1933 = vmatprep.mubr.bf16.mxu1 %v3374_v7  ;;  %v707_v10 = vld [vmem:[%s5464_s1 + $0x1c0] sm:$0xff] }
  0xf6   :  { %v1262_v15 = vmul.f32 %v1099_v14, %v722_v17  ;;  %v1094_v16 = vpop.permute.xlu0 %1093  ;;  %v3391_v17 = vld [vmem:[%s5463_s2 + $0x120] ss:$24 sps:$4 sm:$0xff]   ;;  %v3399_v14 = vld [vmem:[%s5463_s2 + $0x14] ss:$24 sps:$4 sm:$0xff]  }
  0xf7   :  { %v1261_v18 = vmul.f32 %v1094_v16, %v721_v11  ;;  %3241 = vmatpush3.bf16.msra.mxu1 %v1304_v12 }
  0xf9   :  { %v1316_v21 = vpack.c.bf16 %v1262_v15, %v1261_v18  ;;  %v1049_v22 = vpop.permute.xlu1 %1048 }
  0xfa   :  { %v1252_v25 = vmul.f32 %v1049_v22, %v712_v19  ;;  %v1044_v26 = vpop.permute.xlu0 %1043  ;;  %v692_v19 = vld [vmem:[%s5464_s1 + $0x148] sm:$0xff] }
  0xfb   :  { %v1251_v28 = vmul.f32 %v1044_v26, %v711_v5  ;;  %2104 = vmatpush1.bf16.msra.mxu0 %v1316_v21  ;;  %v691_v5 = vld [vmem:[%s5464_s1 + $0x140] sm:$0xff] }
  0xfc   :  { %2105 = vmatprep.subr.bf16.mxu0 %v3882_v0  ;;  %1878 = vmatmul.mubr.bf16.gmra.mxu0 %v3373_v20  ;;  %v715_v26 = vld [vmem:[%s5464_s1 + $0x200] sm:$0xff] }
  0xfd   :  { %v1311_v32 = vpack.c.bf16 %v1252_v25, %v1251_v28  ;;  %v969_v33 = vpop.permute.xlu1 %968  ;;  %1934 = vmatmul.mubr.bf16.gmra.mxu1 %v3376_v23  ;;  %1885 = vmatprep.mubr.bf16.mxu0 %v3377_v24  ;;  %v716_v25 = vld [vmem:[%s5464_s1 + $0x208] sm:$0xff] }
  0xfe   :  { %v1236_v34 = vmul.f32 %v969_v33, %v696_v29  ;;  %v964_v35 = vpop.permute.xlu0 %963  ;;  %1941 = vmatprep.mubr.bf16.mxu1 %v3380_v27  ;;  %v706_v33 = vld [vmem:[%s5464_s1 + $0x1b8] sm:$0xff] }
  0xff   :  { %v1235_v36 = vmul.f32 %v964_v35, %v695_v31  ;;  %3242 = vmatprep.subr.bf16.mxu1 %v1311_v32 }
 0x101   :  { %v1303_v40 = vpack.c.bf16 %v1236_v34, %v1235_v36  ;;  %v1089_v41 = vpop.permute.xlu1 %1088  ;;  %v705_v34 = vld [vmem:[%s5464_s1 + $0x1b0] sm:$0xff] }
 0x102   :  { %v1260_v44 = vmul.f32 %v1089_v41, %v720_v37  ;;  %v1084_v45 = vpop.permute.xlu0 %1083  ;;  %v689_v41 = vld [vmem:[%s5464_s1 + $0x130] sm:$0xff] }
 0x103   :  { %v1259_v47 = vmul.f32 %v1084_v45, %v719_v38  ;;  %3243 = vmatpush3.bf16.msra.mxu1 %v1303_v40  ;;  %v690_v40 = vld [vmem:[%s5464_s1 + $0x138] sm:$0xff] }
 0x104   :  { %1886 = vmatmul.mubr.bf16.gmra.mxu0 %v3379_v39 }
 0x105   :  { %v1315_v49 = vpack.c.bf16 %v1260_v44, %v1259_v47  ;;  %v1039_v50 = vpop.permute.xlu1 %1038  ;;  %1942 = vmatmul.mubr.bf16.gmra.mxu1 %v3382_v42  ;;  %1893 = vmatprep.mubr.bf16.mxu0 %v3383_v43  ;;  %v740_v47 = vld [vmem:[%s5464_s1 + $0x2c8] sm:$0xff] }
 0x106   :  { %v1250_v51 = vmul.f32 %v1039_v50, %v710_v30  ;;  %v1034_v52 = vpop.permute.xlu0 %1033  ;;  %1949 = vmatprep.mubr.bf16.mxu1 %v3386_v46  ;;  %v739_v30 = vld [vmem:[%s5464_s1 + $0x2c0] sm:$0xff] }
 0x107   :  { %v1249_v53 = vmul.f32 %v1034_v52, %v709_v48  ;;  %2106 = vmatpush1.bf16.msra.mxu0 %v1315_v49 }
 0x108   :  { %2107 = vmatprep.subr.bf16.mxu0 %v3882_v0 }
 0x109   :  { %v1310_v57 = vpack.c.bf16 %v1250_v51, %v1249_v53  ;;  %v959_v58 = vpop.permute.xlu1 %958  ;;  %v704_v53 = vld [vmem:[%s5464_s1 + $0x1a8] sm:$0xff] }
 0x10a   :  { %v1234_v60 = vmul.f32 %v959_v58, %v694_v54  ;;  %v954_v61 = vpop.permute.xlu0 %953  ;;  %v703_v54 = vld [vmem:[%s5464_s1 + $0x1a0] sm:$0xff] }
 0x10b   :  { %v1233_v63 = vmul.f32 %v954_v61, %v693_v55  ;;  %3244 = vmatprep.subr.bf16.mxu1 %v1310_v57 }
 0x10c   :  { %1894 = vmatmul.mubr.bf16.gmra.mxu0 %v3385_v56 }
 0x10d   :  { %v1302_v1 = vpack.c.bf16 %v1234_v60, %v1233_v63  ;;  %v1079_v4 = vpop.permute.xlu1 %1078  ;;  %1950 = vmatmul.mubr.bf16.gmra.mxu1 %v3388_v59  ;;  %1901 = vmatprep.mubr.bf16.mxu0 %v3389_v13  ;;  %v688_v13 = vld [vmem:[%s5464_s1 + $0x128] sm:$0xff]  ;;  %v687_v60 = vld [vmem:[%s5464_s1 + $0x120] sm:$0xff] }
 0x10e   :  { %v1258_v6 = vmul.f32 %v1079_v4, %v718_v2  ;;  %v1074_v7 = vpop.permute.xlu0 %1073  ;;  %1990 = vmatprep.mubr.bf16.mxu1 %v3394_v62  ;;  %v737_v4 = vld [vmem:[%s5464_s1 + $0x2b0] sm:$0xff] }
 0x10f   :  { %v1257_v8 = vmul.f32 %v1074_v7, %v717_v3  ;;  %3245 = vmatpush3.bf16.msra.mxu1 %v1302_v1  ;;  %v738_v1 = vld [vmem:[%s5464_s1 + $0x2b8] sm:$0xff] }
 0x111   :  { %v1314_v11 = vpack.c.bf16 %v1258_v6, %v1257_v8  ;;  %v1029_v12 = vpop.permute.xlu1 %1028 }
 0x112   :  { %v1248_v15 = vmul.f32 %v1029_v12, %v708_v9  ;;  %v1024_v16 = vpop.permute.xlu0 %1023 }
 0x113   :  { %v1247_v18 = vmul.f32 %v1024_v16, %v707_v10  ;;  %2108 = vmatpush1.bf16.msra.mxu0 %v1314_v11  ;;  %v701_v11 = vld [vmem:[%s5464_s1 + $0x190] sm:$0xff] }
 0x114   :  { %2109 = vmatprep.subr.bf16.mxu0 %v3882_v0  ;;  %1902 = vmatmul.mubr.bf16.gmra.mxu0 %v3391_v17  ;;  %v702_v17 = vld [vmem:[%s5464_s1 + $0x198] sm:$0xff] }
 0x115   :  { %v1309_v20 = vpack.c.bf16 %v1248_v15, %v1247_v18  ;;  %v949_v21 = vpop.permute.xlu1 %948  ;;  %3133 = vmatprep.mubr.msk.bf16.mxu0 %vm1781_vm0, %v3399_v14 }
 0x116   :  { %v1232_v22 = vmul.f32 %v949_v21, %v692_v19  ;;  %v944_v23 = vpop.permute.xlu0 %943  ;;  %v686_v19 = vld [vmem:[%s5464_s1 + $0x118] sm:$0xff] }
 0x117   :  { %v1231_v24 = vmul.f32 %v944_v23, %v691_v5  ;;  %3246 = vmatprep.subr.bf16.mxu1 %v1309_v20  ;;  %v685_v5 = vld [vmem:[%s5464_s1 + $0x110] sm:$0xff] }
 0x119   :  { %v1301_v27 = vpack.c.bf16 %v1232_v22, %v1231_v24  ;;  %v1069_v28 = vpop.permute.xlu1 %1068 }
 0x11a   :  { %v1256_v29 = vmul.f32 %v1069_v28, %v716_v25  ;;  %v1064_v31 = vpop.permute.xlu0 %1063  ;;  %v736_v25 = vld [vmem:[%s5464_s1 + $0x2a8] sm:$0xff] }
 0x11b   :  { %v1255_v32 = vmul.f32 %v1064_v31, %v715_v26  ;;  %3247 = vmatpush3.bf16.msra.mxu1 %v1301_v27  ;;  %v735_v26 = vld [vmem:[%s5464_s1 + $0x2a0] sm:$0xff] }
 0x11d   :  { %v1313_v35 = vpack.c.bf16 %v1256_v29, %v1255_v32  ;;  %v1019_v36 = vpop.permute.xlu1 %1018 }
 0x11e   :  { %v1246_v37 = vmul.f32 %v1019_v36, %v706_v33  ;;  %v1014_v38 = vpop.permute.xlu0 %1013  ;;  %v700_v33 = vld [vmem:[%s5464_s1 + $0x188] sm:$0xff] }
 0x11f   :  { %v1245_v39 = vmul.f32 %v1014_v38, %v705_v34  ;;  %2110 = vmatpush1.bf16.msra.mxu0 %v1313_v35  ;;  %v699_v34 = vld [vmem:[%s5464_s1 + $0x180] sm:$0xff] }
 0x120   :  { %2117 = vmatprep.subr.bf16.mxu0 %v3882_v0 }
 0x121   :  { %v1308_v42 = vpack.c.bf16 %v1246_v37, %v1245_v39  ;;  %v939_v43 = vpop.permute.xlu1 %938 }
 0x122   :  { %v1230_v44 = vmul.f32 %v939_v43, %v690_v40  ;;  %v934_v45 = vpop.permute.xlu0 %933  ;;  %v684_v40 = vld [vmem:[%s5464_s1 + $0x108] sm:$0xff] }
 0x123   :  { %v1229_v46 = vmul.f32 %v934_v45, %v689_v41  ;;  %3248 = vmatprep.subr.bf16.mxu1 %v1308_v42  ;;  %v683_v41 = vld [vmem:[%s5464_s1 + $0x100] sm:$0xff] }
 0x125   :  { %v1300_v48 = vpack.c.bf16 %v1230_v44, %v1229_v46  ;;  %v1189_v49 = vpop.permute.xlu1 %1188 }
 0x126   :  { %v1280_v50 = vmul.f32 %v1189_v49, %v740_v47  ;;  %v1184_v51 = vpop.permute.xlu0 %1183  ;;  %v734_v47 = vld [vmem:[%s5464_s1 + $0x298] sm:$0xff] }
 0x127   :  { %v1279_v52 = vmul.f32 %v1184_v51, %v739_v30  ;;  %3249 = vmatpush3.bf16.msra.mxu1 %v1300_v48  ;;  %v733_v30 = vld [vmem:[%s5464_s1 + $0x290] sm:$0xff] }
 0x129   :  { %v1325_v55 = vpack.c.bf16 %v1280_v50, %v1279_v52  ;;  %v1009_v56 = vpop.permute.xlu1 %1008  ;;  %v3392_v52 = vld [vmem:[%s5463_s2 + $0x8] ss:$24 sps:$4 sm:$0xff]  }
 0x12a   :  { %v1244_v57 = vmul.f32 %v1009_v56, %v704_v53  ;;  %v1004_v58 = vpop.permute.xlu0 %1003  ;;  %v731_v56 = vld [vmem:[%s5464_s1 + $0x280] sm:$0xff] }
 0x12b   :  { %v1243_v59 = vmul.f32 %v1004_v58, %v703_v54  ;;  %2118 = vmatpush2.bf16.msra.mxu0 %v1325_v55  ;;  %v732_v54 = vld [vmem:[%s5464_s1 + $0x288] sm:$0xff]  ;;  %v3395_v55 = vld [vmem:[%s5463_s2 + $0x3c] ss:$24 sps:$4 sm:$0xff]  }
 0x12c   :  { %2119 = vmatprep.subr.bf16.mxu0 %v3882_v0 }
 0x12d   :  { %v1307_v61 = vpack.c.bf16 %v1244_v57, %v1243_v59  ;;  %v929_v62 = vpop.permute.xlu1 %928 }
 0x12e   :  { %v1228_v63 = vmul.f32 %v929_v62, %v688_v13  ;;  %v924_v2 = vpop.permute.xlu0 %923  ;;  %v3397_v62 = vld [vmem:[%s5463_s2 + $0x10] ss:$24 sps:$4 sm:$0xff]  }
 0x12f   :  { %v1227_v3 = vmul.f32 %v924_v2, %v687_v60  ;;  %3250 = vmatprep.subr.bf16.mxu1 %v1307_v61  ;;  %v3401_v2 = vld [vmem:[%s5463_s2 + $0x6c] ss:$24 sps:$4 sm:$0xff]  }
 0x131   :  { %v1299_v6 = vpack.c.bf16 %v1228_v63, %v1227_v3  ;;  %v1179_v7 = vpop.permute.xlu1 %1178  ;;  %v3400_v63 = vld [vmem:[%s5463_s2 + $0x38] ss:$24 sps:$4 sm:$0xff]   ;;  %v3403_v3 = vld [vmem:[%s5463_s2 + $0x44] ss:$24 sps:$4 sm:$0xff]  }
 0x132   :  { %v1278_v8 = vmul.f32 %v1179_v7, %v738_v1  ;;  %v1174_v9 = vpop.permute.xlu0 %1173  ;;  %v3406_v1 = vld [vmem:[%s5463_s2 + $0x40] ss:$24 sps:$4 sm:$0xff]  }
 0x133   :  { %v1277_v10 = vmul.f32 %v1174_v9, %v737_v4  ;;  %3251 = vmatpush3.bf16.msra.mxu1 %v1299_v6  ;;  %v3407_v4 = vld [vmem:[%s5463_s2 + $0x9c] ss:$24 sps:$4 sm:$0xff]   ;;  %v3411_v7 = vld [vmem:[%s5463_s2 + $0x98] ss:$24 sps:$4 sm:$0xff]   ;;  %v3413_v9 = vld [vmem:[%s5463_s2 + $0xcc] ss:$24 sps:$4 sm:$0xff]  }
 0x134   :  { %v3409_v6 = vld [vmem:[%s5463_s2 + $0x74] ss:$24 sps:$4 sm:$0xff]  }
 0x135   :  { %v1324_v12 = vpack.c.bf16 %v1278_v8, %v1277_v10  ;;  %v999_v14 = vpop.permute.xlu1 %998  ;;  %v3412_v8 = vld [vmem:[%s5463_s2 + $0x70] ss:$24 sps:$4 sm:$0xff]   ;;  %v3415_v10 = vld [vmem:[%s5463_s2 + $0xa4] ss:$24 sps:$4 sm:$0xff]  }
 0x136   :  { %v1242_v15 = vmul.f32 %v999_v14, %v702_v17  ;;  %v994_v16 = vpop.permute.xlu0 %993  ;;  %v3417_v17 = vld [vmem:[%s5463_s2 + $0xc8] ss:$24 sps:$4 sm:$0xff]   ;;  %v3421_v14 = vld [vmem:[%s5463_s2 + $0xd4] ss:$24 sps:$4 sm:$0xff]  }
 0x137   :  { %v1241_v18 = vmul.f32 %v994_v16, %v701_v11  ;;  %2120 = vmatpush2.bf16.msra.mxu0 %v1324_v12  ;;  %v3418_v11 = vld [vmem:[%s5463_s2 + $0xa0] ss:$24 sps:$4 sm:$0xff]   ;;  %v3419_v12 = vld [vmem:[%s5463_s2 + $0xfc] ss:$24 sps:$4 sm:$0xff]   ;;  %v3424_v16 = vld [vmem:[%s5463_s2 + $0xd0] ss:$24 sps:$4 sm:$0xff]  }
 0x138   :  { %2121 = vmatprep.subr.bf16.mxu0 %v3882_v0 }
 0x139   :  { %v1306_v20 = vpack.c.bf16 %v1242_v15, %v1241_v18  ;;  %v919_v21 = vpop.permute.xlu1 %918  ;;  %v3423_v15 = vld [vmem:[%s5463_s2 + $0xf8] ss:$24 sps:$4 sm:$0xff]   ;;  %v3425_v18 = vld [vmem:[%s5463_s2 + $0x12c] ss:$24 sps:$4 sm:$0xff]  }
 0x13a   :  { %v1226_v22 = vmul.f32 %v919_v21, %v686_v19  ;;  %v914_v23 = vpop.permute.xlu0 %913  ;;  %v3427_v19 = vld [vmem:[%s5463_s2 + $0x104] ss:$24 sps:$4 sm:$0xff]  }
 0x13b   :  { %v1225_v24 = vmul.f32 %v914_v23, %v685_v5  ;;  %3252 = vmatprep.subr.bf16.mxu1 %v1306_v20  ;;  %v3429_v5 = vld [vmem:[%s5463_s2 + $0x128] ss:$24 sps:$4 sm:$0xff]   ;;  %v3431_v21 = vld [vmem:[%s5463_s2 + $0x15c] ss:$24 sps:$4 sm:$0xff]   ;;  %v3435_v23 = vld [vmem:[%s5463_s2 + $0x158] ss:$24 sps:$4 sm:$0xff]  }
 0x13c   :  { %v3430_v20 = vld [vmem:[%s5463_s2 + $0x100] ss:$24 sps:$4 sm:$0xff]  }
 0x13d   :  { %v1298_v27 = vpack.c.bf16 %v1226_v22, %v1225_v24  ;;  %v1169_v28 = vpop.permute.xlu1 %1168  ;;  %v3433_v22 = vld [vmem:[%s5463_s2 + $0x134] ss:$24 sps:$4 sm:$0xff]   ;;  %v3436_v24 = vld [vmem:[%s5463_s2 + $0x130] ss:$24 sps:$4 sm:$0xff]  }
 0x13e   :  { %v1276_v29 = vmul.f32 %v1169_v28, %v736_v25  ;;  %v1164_v31 = vpop.permute.xlu0 %1163  ;;  %v3437_v25 = vld [vmem:[%s5463_s2 + $0x18c] ss:$24 sps:$4 sm:$0xff]   ;;  %v3442_v28 = vld [vmem:[%s5463_s2 + $0x160] ss:$24 sps:$4 sm:$0xff]  }
 0x13f   :  { %v1275_v32 = vmul.f32 %v1164_v31, %v735_v26  ;;  %3253 = vmatpush3.bf16.msra.mxu1 %v1298_v27  ;;  %v3439_v26 = vld [vmem:[%s5463_s2 + $0x164] ss:$24 sps:$4 sm:$0xff]   ;;  %v3441_v27 = vld [vmem:[%s5463_s2 + $0x188] ss:$24 sps:$4 sm:$0xff]   ;;  %v3445_v31 = vld [vmem:[%s5463_s2 + $0x194] ss:$24 sps:$4 sm:$0xff]  }
 0x141   :  { %v1323_v35 = vpack.c.bf16 %v1276_v29, %v1275_v32  ;;  %v989_v36 = vpop.permute.xlu1 %988  ;;  %v3443_v29 = vld [vmem:[%s5463_s2 + $0x1bc] ss:$24 sps:$4 sm:$0xff]   ;;  %v3447_v32 = vld [vmem:[%s5463_s2 + $0x1b8] ss:$24 sps:$4 sm:$0xff]  }
 0x142   :  { %v1240_v37 = vmul.f32 %v989_v36, %v700_v33  ;;  %v984_v38 = vpop.permute.xlu0 %983  ;;  %v3448_v33 = vld [vmem:[%s5463_s2 + $0x190] ss:$24 sps:$4 sm:$0xff]  }
 0x143   :  { %v1239_v39 = vmul.f32 %v984_v38, %v699_v34  ;;  %2122 = vmatpush2.bf16.msra.mxu0 %v1323_v35  ;;  %v3449_v34 = vld [vmem:[%s5463_s2 + $0x1ec] ss:$24 sps:$4 sm:$0xff]   ;;  %v3453_v36 = vld [vmem:[%s5463_s2 + $0x1e8] ss:$24 sps:$4 sm:$0xff]   ;;  %v3455_v38 = vld [vmem:[%s5463_s2 + $0x21c] ss:$24 sps:$4 sm:$0xff]  }
 0x144   :  { %2123 = vmatprep.subr.bf16.mxu0 %v3882_v0  ;;  %v3451_v35 = vld [vmem:[%s5463_s2 + $0x1c4] ss:$24 sps:$4 sm:$0xff]  }
 0x145   :  { %v1305_v42 = vpack.c.bf16 %v1240_v37, %v1239_v39  ;;  %v909_v43 = vpop.permute.xlu1 %908  ;;  %v3454_v37 = vld [vmem:[%s5463_s2 + $0x1c0] ss:$24 sps:$4 sm:$0xff]   ;;  %v3457_v39 = vld [vmem:[%s5463_s2 + $0x1f4] ss:$24 sps:$4 sm:$0xff]  }
 0x146   :  { %v1224_v44 = vmul.f32 %v909_v43, %v684_v40  ;;  %v904_v45 = vpop.permute.xlu0 %903  ;;  %v3459_v40 = vld [vmem:[%s5463_s2 + $0x218] ss:$24 sps:$4 sm:$0xff]   ;;  %v3463_v43 = vld [vmem:[%s5463_s2 + $0x224] ss:$24 sps:$4 sm:$0xff]  }
 0x147   :  { %v1223_v46 = vmul.f32 %v904_v45, %v683_v41  ;;  %3254 = vmatprep.subr.bf16.mxu1 %v1305_v42  ;;  %v3460_v41 = vld [vmem:[%s5463_s2 + $0x1f0] ss:$24 sps:$4 sm:$0xff]   ;;  %v3461_v42 = vld [vmem:[%s5463_s2 + $0x24c] ss:$24 sps:$4 sm:$0xff]  }
 0x149   :  { %v1297_v48 = vpack.c.bf16 %v1224_v44, %v1223_v46  ;;  %v1159_v49 = vpop.permute.xlu1 %1158 }
 0x14a   :  { %v1274_v50 = vmul.f32 %v1159_v49, %v734_v47  ;;  %v1154_v51 = vpop.permute.xlu0 %1153  ;;  %v3466_v49 = vld [vmem:[%s5463_s2 + $0x220] ss:$24 sps:$4 sm:$0xff]  }
 0x14b   :  { %v1273_v53 = vmul.f32 %v1154_v51, %v733_v30  ;;  %3255 = vmatpush3.bf16.msra.mxu1 %v1297_v48  ;;  %v3465_v48 = vld [vmem:[%s5463_s2 + $0x248] ss:$24 sps:$4 sm:$0xff]   ;;  %v3467_v51 = vld [vmem:[%s5463_s2 + $0x254] ss:$24 sps:$4 sm:$0xff]  }
 0x14d   :  { %v1322_v57 = vpack.c.bf16 %v1274_v50, %v1273_v53  ;;  %v1149_v58 = vpop.permute.xlu1 %1148 }
 0x14e   :  { %v1272_v59 = vmul.f32 %v1149_v58, %v732_v54  ;;  %1991 = vmatmul.mubr.bf16.vlgmr.msra.gmra.mxu1 %v3392_v52  ;;  %v1144_v13 = vpop.permute.xlu0 %1143 }
 0x14f   :  { %v1271_v60 = vmul.f32 %v1144_v13, %v731_v56  ;;  %2124 = vmatpush2.bf16.msra.mxu0 %v1322_v57  ;;  %1998 = vmatprep.mubr.bf16.mxu1 %v3395_v55 }
 0x150   :  { %2125 = vmatprep.subr.bf16.mxu0 %v3882_v0  ;;  %v3405_v0 = vld [vmem:[%s5463_s2 + $0x68] ss:$24 sps:$4 sm:$0xff]  }
 0x151   :  { %v1321_v61 = vpack.c.bf16 %v1272_v59, %v1271_v60  ;;  %v3469_v59 = vld [vmem:[%s5463_s2 + $0x250] ss:$24 sps:$4 sm:$0xff]  }
 0x153   :  { %2126 = vmatpush2.bf16.msra.mxu0 %v1321_v61 }
 0x156   :  { %1999 = vmatmul.mubr.bf16.gmra.mxu1 %v3400_v63  ;;  %2128 = vmatmul.mubr.bf16.vlgmr.msra.gmra.mxu0 %v3397_v62 }
 0x157   :  { %2006 = vmatprep.mubr.bf16.mxu1 %v3401_v2  ;;  %3134 = vmatprep.mubr.msk.bf16.mxu0 %vm1781_vm0, %v3403_v3 }
 0x15e   :  { %2007 = vmatmul.mubr.bf16.gmra.mxu1 %v3405_v0  ;;  %2136 = vmatmul.mubr.bf16.gmra.mxu0 %v3406_v1 }
 0x15f   :  { %2014 = vmatprep.mubr.bf16.mxu1 %v3407_v4  ;;  %3135 = vmatprep.mubr.msk.bf16.mxu0 %vm1781_vm0, %v3409_v6 }
 0x166   :  { %2015 = vmatmul.mubr.bf16.gmra.mxu1 %v3411_v7  ;;  %2144 = vmatmul.mubr.bf16.gmra.mxu0 %v3412_v8 }
 0x167   :  { %2022 = vmatprep.mubr.bf16.mxu1 %v3413_v9  ;;  %3136 = vmatprep.mubr.msk.bf16.mxu0 %vm1781_vm0, %v3415_v10 }
 0x16e   :  { %2023 = vmatmul.mubr.bf16.gmra.mxu1 %v3417_v17  ;;  %2152 = vmatmul.mubr.bf16.gmra.mxu0 %v3418_v11 }
 0x16f   :  { %2030 = vmatprep.mubr.bf16.mxu1 %v3419_v12  ;;  %3137 = vmatprep.mubr.msk.bf16.mxu0 %vm1781_vm0, %v3421_v14 }
 0x176   :  { %2031 = vmatmul.mubr.bf16.gmra.mxu1 %v3423_v15  ;;  %2160 = vmatmul.mubr.bf16.gmra.mxu0 %v3424_v16 }
 0x177   :  { %2038 = vmatprep.mubr.bf16.mxu1 %v3425_v18  ;;  %3138 = vmatprep.mubr.msk.bf16.mxu0 %vm1781_vm0, %v3427_v19 }
 0x17e   :  { %2039 = vmatmul.mubr.bf16.gmra.mxu1 %v3429_v5  ;;  %2168 = vmatmul.mubr.bf16.gmra.mxu0 %v3430_v20 }
 0x17f   :  { %2046 = vmatprep.mubr.bf16.mxu1 %v3431_v21  ;;  %3139 = vmatprep.mubr.msk.bf16.mxu0 %vm1781_vm0, %v3433_v22 }
 0x186   :  { %2047 = vmatmul.mubr.bf16.gmra.mxu1 %v3435_v23  ;;  %2176 = vmatmul.mubr.bf16.gmra.mxu0 %v3436_v24 }
 0x187   :  { %2054 = vmatprep.mubr.bf16.mxu1 %v3437_v25  ;;  %3140 = vmatprep.mubr.msk.bf16.mxu0 %vm1781_vm0, %v3439_v26 }
 0x18e   :  { %2055 = vmatmul.mubr.bf16.gmra.mxu1 %v3441_v27  ;;  %2184 = vmatmul.mubr.bf16.gmra.mxu0 %v3442_v28 }
 0x18f   :  { %2062 = vmatprep.mubr.bf16.mxu1 %v3443_v29  ;;  %3141 = vmatprep.mubr.msk.bf16.mxu0 %vm1781_vm0, %v3445_v31 }
 0x196   :  { %2063 = vmatmul.mubr.bf16.gmra.mxu1 %v3447_v32  ;;  %2192 = vmatmul.mubr.bf16.gmra.mxu0 %v3448_v33 }
 0x197   :  { %2070 = vmatprep.mubr.bf16.mxu1 %v3449_v34  ;;  %3142 = vmatprep.mubr.msk.bf16.mxu0 %vm1781_vm0, %v3451_v35 }
 0x19e   :  { %2071 = vmatmul.mubr.bf16.gmra.mxu1 %v3453_v36  ;;  %2200 = vmatmul.mubr.bf16.gmra.mxu0 %v3454_v37 }
 0x19f   :  { %2078 = vmatprep.mubr.bf16.mxu1 %v3455_v38  ;;  %3143 = vmatprep.mubr.msk.bf16.mxu0 %vm1781_vm0, %v3457_v39 }
 0x1a3   :  { %v4761_v47 = vpop.f32.mrf.mxu0 }
 0x1a4   :  { %v3204_v44 = vpop.f32.mrf.mxu1 }
 0x1a5   :  { %v4774_v53 = vpop.f32.mrf.mxu0 }
 0x1a6   :  { %2079 = vmatmul.mubr.bf16.gmra.mxu1 %v3459_v40  ;;  %2208 = vmatmul.mubr.bf16.gmra.mxu0 %v3460_v41  ;;  %v3205_v45 = vpop.f32.mrf.mxu1 }
 0x1a7   :  { %2086 = vmatprep.mubr.bf16.mxu1 %v3461_v42  ;;  %3144 = vmatprep.mubr.msk.bf16.mxu0 %vm1781_vm0, %v3463_v43  ;;  %v4759_v46 = vadd.f32 %v3205_v45, %v3204_v44  ;;  %v4779_v57 = vpop.f32.mrf.mxu0 }
 0x1a8   :  { %v3207_v30 = vpop.f32.mrf.mxu1 }
 0x1a9   :  { %v3166_v61 = vpop.f32.mrf.mxu0 }
 0x1aa   :  { %v3208_v50 = vpop.f32.mrf.mxu1 }
 0x1ab   :  { %v4772_v52 = vadd.f32 %v3208_v50, %v3207_v30  ;;  %v4788_v3 = vpop.f32.mrf.mxu0 }
 0x1ac   :  { %v3210_v54 = vpop.f32.mrf.mxu1 }
 0x1ad   :  { %v3169_v6 = vpop.f32.mrf.mxu0 }
 0x1ae   :  { %2087 = vmatmul.mubr.bf16.gmra.mxu1 %v3465_v48  ;;  %2216 = vmatmul.mubr.bf16.gmra.mxu0 %v3466_v49  ;;  %v3211_v55 = vpop.f32.mrf.mxu1 }
 0x1af   :  { %3145 = vmatprep.mubr.msk.bf16.mxu0 %vm1781_vm0, %v3467_v51  ;;  %v4777_v56 = vadd.f32 %v3211_v55, %v3210_v54  ;;  %v4792_v9 = vpop.f32.mrf.mxu0  ;;  %v3164_v54 = vadd.f32 %v4774_v53, %v4761_v47 }
 0x1b0   :  { %v3213_v58 = vpop.f32.mrf.mxu1 }
 0x1b1   :  { %v4796_v12 = vpop.f32.mrf.mxu0 }
 0x1b2   :  { %v3214_v13 = vpop.f32.mrf.mxu1 }
 0x1b3   :  { %v4784_v60 = vadd.f32 %v3214_v13, %v3213_v58  ;;  %v4800_v18 = vpop.f32.mrf.mxu0 }
 0x1b4   :  { %v3216_v62 = vpop.f32.mrf.mxu1 }
 0x1b5   :  { %v4804_v21 = vpop.f32.mrf.mxu0 }
 0x1b6   :  { %2224 = vmatmul.mubr.bf16.gmra.mxu0 %v3469_v59  ;;  %v3217_v63 = vpop.f32.mrf.mxu1 }
 0x1b7   :  { %v4786_v2 = vadd.f32 %v3217_v63, %v3216_v62  ;;  %v4808_v25 = vpop.f32.mrf.mxu0 }
 0x1b8   :  { %v3219_v0 = vpop.f32.mrf.mxu1 }
 0x1b9   :  { %v4812_v29 = vpop.f32.mrf.mxu0 }
 0x1ba   :  { %v3220_v1 = vpop.f32.mrf.mxu1 }
 0x1bb   :  { %v4790_v4 = vadd.f32 %v3220_v1, %v3219_v0  ;;  %v3167_v0 = vadd.f32 %v3166_v61, %v4779_v57 }
 0x1bc   :  { %v4816_v32 = vpop.f32.mrf.mxu0 }
 0x1bd   :  { %v3222_v7 = vpop.f32.mrf.mxu1 }
 0x1be   :  { %v4818_v33 = vpop.f32.mrf.mxu0 }
 0x1bf   :  { %v3223_v8 = vpop.f32.mrf.mxu1 }
 0x1c0   :  { %v4794_v10 = vadd.f32 %v3223_v8, %v3222_v7  ;;  %v4820_v34 = vpop.f32.mrf.mxu0 }
 0x1c1   :  { %v3225_v17 = vpop.f32.mrf.mxu1 }
 0x1c2   :  { %v4822_v35 = vpop.f32.mrf.mxu0 }
 0x1c3   :  { %v3226_v11 = vpop.f32.mrf.mxu1 }
 0x1c4   :  { %v4798_v14 = vadd.f32 %v3226_v11, %v3225_v17  ;;  %v4824_v36 = vpop.f32.mrf.mxu0 }
 0x1c5   :  { %v3228_v15 = vpop.f32.mrf.mxu1 }
 0x1c6   :  { %v4826_v37 = vpop.f32.mrf.mxu0 }
 0x1c7   :  { %v3229_v16 = vpop.f32.mrf.mxu1 }
 0x1c8   :  { %v4802_v19 = vadd.f32 %v3229_v16, %v3228_v15  ;;  %v4828_v38 = vpop.f32.mrf.mxu0  ;;  %v3170_v16 = vadd.f32 %v3169_v6, %v4788_v3 }
 0x1c9   :  { %v3231_v5 = vpop.f32.mrf.mxu1 }
 0x1ca   :  { %v4830_v39 = vpop.f32.mrf.mxu0 }
 0x1cb   :  { %v3232_v20 = vpop.f32.mrf.mxu1 }
 0x1cc   :  { %v4806_v22 = vadd.f32 %v3232_v20, %v3231_v5  ;;  %v4832_v40 = vpop.f32.mrf.mxu0 }
 0x1cd   :  { %v3234_v23 = vpop.f32.mrf.mxu1 }
 0x1ce   :  { %v4834_v41 = vpop.f32.mrf.mxu0 }
 0x1cf   :  { %v3235_v24 = vpop.f32.mrf.mxu1 }
 0x1d0   :  { %v4810_v26 = vadd.f32 %v3235_v24, %v3234_v23  ;;  %v4836_v42 = vpop.f32.mrf.mxu0 }
 0x1d1   :  { %v3237_v27 = vpop.f32.mrf.mxu1 }
 0x1d2   :  { %v4838_v43 = vpop.f32.mrf.mxu0 }
 0x1d3   :  { %v3238_v28 = vpop.f32.mrf.mxu1 }
 0x1d4   :  { %v4814_v31 = vadd.f32 %v3238_v28, %v3237_v27  ;;  %v4840_v44 = vpop.f32.mrf.mxu0 }
 0x1d6   :  { %v4842_v45 = vpop.f32.mrf.mxu0 }
 0x1d8   :  { %v4844_v48 = vpop.f32.mrf.mxu0 }
 0x1da   :  { %v4848_v55 = vpop.f32.mrf.mxu0 }
 0x20e   :  { %v3256_v30 = vpop.f32.mrf.mxu1 }
 0x210   :  { %v3257_v49 = vpop.f32.mrf.mxu1 }
 0x211   :  { %v3258_v50 = vadd.f32 %v3257_v49, %v3256_v30  ;;  %v3173_v30 = vadd.f32 %v4796_v12, %v4792_v9 }
 0x212   :  { %v3259_v51 = vpop.f32.mrf.mxu1 }
 0x213   :  { %v1993_v13 = vadd.f32 %v3258_v50, %v3164_v54 }
 0x214   :  { %v3260_v58 = vpop.f32.mrf.mxu1 }
 0x215   :  { %v3261_v59 = vadd.f32 %v3260_v58, %v3259_v51 }
 0x216   :  { %v3262_v62 = vpop.f32.mrf.mxu1  ;;  %v2129_v63 = vpop.f32.mrf.mxu0 }
 0x217   :  { %v4851_v1 = vadd.f32 %v2129_v63, %v1993_v13  ;;  %v1996_v11 = vadd.f32 %v3261_v59, %v3167_v0  ;;  %v3176_v13 = vadd.f32 %v4804_v21, %v4800_v18 }
 0x218   :  { %v3263_v7 = vpop.f32.mrf.mxu1  ;;  %v2131_v8 = vpop.f32.mrf.mxu0 }
 0x219   :  { %v3264_v17 = vadd.f32 %v3263_v7, %v3262_v62  ;;  %v2233_v15 = vsel %vm2232_vm1, %v4851_v1, 0.0 }
 0x21a   :  { %v3265_v47 = vpop.f32.mrf.mxu1  ;;  %v2132_v53 = vpop.f32.mrf.mxu0  ;;  %2234 = vadd.xlane.f32.xlu0 %v2233_v15 }
 0x21b   :  { %v4856_v5 = vadd.f32 %v2132_v53, %v1996_v11  ;;  %v2001_v57 = vadd.f32 %v3264_v17, %v3170_v16  ;;  %v3179_v11 = vadd.f32 %v4812_v29, %v4808_v25 }
 0x21c   :  { %v3266_v20 = vpop.f32.mrf.mxu1  ;;  %v2134_v23 = vpop.f32.mrf.mxu0 }
 0x21d   :  { %v3267_v24 = vadd.f32 %v3266_v20, %v3265_v47  ;;  %v2236_v61 = vsel %vm2232_vm1, %v4856_v5, 0.0 }
 0x21e   :  { %v3268_v27 = vpop.f32.mrf.mxu1  ;;  %v2137_v28 = vpop.f32.mrf.mxu0  ;;  %2237 = vadd.xlane.f32.xlu1 %v2236_v61 }
 0x21f   :  { %v4862_v49 = vadd.f32 %v2137_v28, %v2001_v57  ;;  %v2004_v6 = vadd.f32 %v3267_v24, %v3173_v30  ;;  %v3182_v24 = vadd.f32 %v4818_v33, %v4816_v32 }
 0x220   :  { %v3269_v50 = vpop.f32.mrf.mxu1  ;;  %v2139_v51 = vpop.f32.mrf.mxu0 }
 0x221   :  { %v3270_v3 = vadd.f32 %v3269_v50, %v3268_v27  ;;  %v2239_v54 = vsel %vm2232_vm1, %v4862_v49, 0.0  ;;  %v3185_v51 = vadd.f32 %v4822_v35, %v4820_v34 }
 0x222   :  { %v3271_v58 = vpop.f32.mrf.mxu1  ;;  %v2140_v59 = vpop.f32.mrf.mxu0  ;;  %2240 = vadd.xlane.f32.xlu0 %v2239_v54 }
 0x223   :  { %v4868_v62 = vadd.f32 %v2140_v59, %v2004_v6  ;;  %v2009_v12 = vadd.f32 %v3270_v3, %v3176_v13 }
 0x224   :  { %v3272_v63 = vpop.f32.mrf.mxu1  ;;  %v2142_v0 = vpop.f32.mrf.mxu0 }
 0x225   :  { %v3273_v9 = vadd.f32 %v3272_v63, %v3271_v58  ;;  %v2242_v7 = vsel %vm2232_vm1, %v4868_v62, 0.0  ;;  %v3188_v63 = vadd.f32 %v4826_v37, %v4824_v36 }
 0x226   :  { %v3274_v8 = vpop.f32.mrf.mxu1  ;;  %v2145_v17 = vpop.f32.mrf.mxu0  ;;  %2243 = vadd.xlane.f32.xlu0 %v2242_v7 }
 0x227   :  { %v4874_v15 = vadd.f32 %v2145_v17, %v2009_v12  ;;  %v2012_v21 = vadd.f32 %v3273_v9, %v3179_v11  ;;  %v3191_v11 = vadd.f32 %v4830_v39, %v4828_v38 }
 0x228   :  { %v3275_v47 = vpop.f32.mrf.mxu1  ;;  %v2147_v53 = vpop.f32.mrf.mxu0 }
 0x229   :  { %v3276_v18 = vadd.f32 %v3275_v47, %v3274_v8  ;;  %v2245_v16 = vsel %vm2232_vm1, %v4874_v15, 0.0 }
 0x22a   :  { %v3277_v20 = vpop.f32.mrf.mxu1  ;;  %v2148_v23 = vpop.f32.mrf.mxu0  ;;  %2246 = vadd.xlane.f32.xlu1 %v2245_v16 }
 0x22b   :  { %v4880_v57 = vadd.f32 %v2148_v23, %v2012_v21  ;;  %v2017_v29 = vadd.f32 %v3276_v18, %v3182_v24  ;;  %v3194_v23 = vadd.f32 %v4834_v41, %v4832_v40 }
 0x22c   :  { %v3278_v61 = vpop.f32.mrf.mxu1  ;;  %v2150_v27 = vpop.f32.mrf.mxu0 }
 0x22d   :  { %v3279_v25 = vadd.f32 %v3278_v61, %v3277_v20  ;;  %v2248_v28 = vsel %vm2232_vm1, %v4880_v57, 0.0 }
 0x22e   :  { %v3280_v30 = vpop.f32.mrf.mxu1  ;;  %v2153_v50 = vpop.f32.mrf.mxu0  ;;  %2249 = vadd.xlane.f32.xlu0 %v2248_v28 }
 0x22f   :  { %v4886_v3 = vadd.f32 %v2153_v50, %v2017_v29  ;;  %v2020_v33 = vadd.f32 %v3279_v25, %v3185_v51 }
 0x230   :  { %v3281_v6 = vpop.f32.mrf.mxu1  ;;  %v2155_v54 = vpop.f32.mrf.mxu0 }
 0x231   :  { %v3282_v32 = vadd.f32 %v3281_v6, %v3280_v30  ;;  %v2251_v58 = vsel %vm2232_vm1, %v4886_v3, 0.0  ;;  %v3197_v30 = vadd.f32 %v4838_v43, %v4836_v42 }
 0x232   :  { %v3283_v59 = vpop.f32.mrf.mxu1  ;;  %v2156_v13 = vpop.f32.mrf.mxu0  ;;  %2252 = vadd.xlane.f32.xlu1 %v2251_v58  ;;  %v3200_v58 = vadd.f32 %v4842_v45, %v4840_v44 }
 0x233   :  { %v4892_v0 = vadd.f32 %v2156_v13, %v2020_v33  ;;  %v2025_v35 = vadd.f32 %v3282_v32, %v3188_v63 }
 0x234   :  { %v3284_v9 = vpop.f32.mrf.mxu1  ;;  %v2158_v12 = vpop.f32.mrf.mxu0 }
 0x235   :  { %v3285_v34 = vadd.f32 %v3284_v9, %v3283_v59  ;;  %v2254_v7 = vsel %vm2232_vm1, %v4892_v0, 0.0 }
 0x236   :  { %v3286_v8 = vpop.f32.mrf.mxu1  ;;  %v2161_v17 = vpop.f32.mrf.mxu0  ;;  %2255 = vadd.xlane.f32.xlu0 %v2254_v7 }
 0x237   :  { %v4898_v47 = vadd.f32 %v2161_v17, %v2025_v35  ;;  %v2028_v37 = vadd.f32 %v3285_v34, %v3191_v11  ;;  %v3203_v35 = vadd.f32 %v4848_v55, %v4844_v48 }
 0x238   :  { %v3287_v53 = vpop.f32.mrf.mxu1  ;;  %v2163_v18 = vpop.f32.mrf.mxu0 }
 0x239   :  { %v3288_v36 = vadd.f32 %v3287_v53, %v3286_v8  ;;  %v2257_v21 = vsel %vm2232_vm1, %v4898_v47, 0.0 }
 0x23a   :  { %v3289_v16 = vpop.f32.mrf.mxu1  ;;  %v2164_v20 = vpop.f32.mrf.mxu0  ;;  %2258 = vadd.xlane.f32.xlu1 %v2257_v21 }
 0x23b   :  { %v4904_v24 = vadd.f32 %v2164_v20, %v2028_v37  ;;  %v2033_v39 = vadd.f32 %v3288_v36, %v3194_v23 }
 0x23c   :  { %v3290_v61 = vpop.f32.mrf.mxu1  ;;  %v2166_v27 = vpop.f32.mrf.mxu0 }
 0x23d   :  { %v3291_v38 = vadd.f32 %v3290_v61, %v3289_v16  ;;  %v2260_v25 = vsel %vm2232_vm1, %v4904_v24, 0.0 }
 0x23e   :  { %v3292_v29 = vpop.f32.mrf.mxu1  ;;  %v2169_v28 = vpop.f32.mrf.mxu0  ;;  %2261 = vadd.xlane.f32.xlu0 %v2260_v25 }
 0x23f   :  { %v4910_v50 = vadd.f32 %v2169_v28, %v2033_v39  ;;  %v2036_v41 = vadd.f32 %v3291_v38, %v3197_v30 }
 0x240   :  { %v3293_v51 = vpop.f32.mrf.mxu1  ;;  %v2171_v6 = vpop.f32.mrf.mxu0 }
 0x241   :  { %v3294_v40 = vadd.f32 %v3293_v51, %v3292_v29  ;;  %v2263_v54 = vsel %vm2232_vm1, %v4910_v50, 0.0 }
 0x242   :  { %v3295_v32 = vpop.f32.mrf.mxu1  ;;  %v2172_v33 = vpop.f32.mrf.mxu0  ;;  %2264 = vadd.xlane.f32.xlu1 %v2263_v54 }
 0x243   :  { %v4916_v59 = vadd.f32 %v2172_v33, %v2036_v41  ;;  %v2041_v43 = vadd.f32 %v3294_v40, %v3200_v58 }
 0x244   :  { %v3296_v13 = vpop.f32.mrf.mxu1  ;;  %v2174_v63 = vpop.f32.mrf.mxu0 }
 0x245   :  { %v3297_v42 = vadd.f32 %v3296_v13, %v3295_v32  ;;  %v2266_v9 = vsel %vm2232_vm1, %v4916_v59, 0.0 }
 0x246   :  { %v3298_v12 = vpop.f32.mrf.mxu1  ;;  %v2177_v34 = vpop.f32.mrf.mxu0  ;;  %2267 = vadd.xlane.f32.xlu0 %v2266_v9 }
 0x247   :  { %v4922_v7 = vadd.f32 %v2177_v34, %v2041_v43  ;;  %v2044_v45 = vadd.f32 %v3297_v42, %v3203_v35 }
 0x248   :  { %v3299_v8 = vpop.f32.mrf.mxu1  ;;  %v2179_v17 = vpop.f32.mrf.mxu0 }
 0x249   :  { %v3300_v44 = vadd.f32 %v3299_v8, %v3298_v12  ;;  %v2269_v11 = vsel %vm2232_vm1, %v4922_v7, 0.0 }
 0x24a   :  { %v3301_v53 = vpop.f32.mrf.mxu1  ;;  %v2180_v18 = vpop.f32.mrf.mxu0  ;;  %2270 = vadd.xlane.f32.xlu1 %v2269_v11 }
 0x24b   :  { %v4926_v36 = vadd.f32 %v2180_v18, %v2044_v45  ;;  %v2049_v20 = vadd.f32 %v3300_v44, %v4759_v46 }
 0x24c   :  { %v3302_v37 = vpop.f32.mrf.mxu1  ;;  %v2182_v21 = vpop.f32.mrf.mxu0 }
 0x24d   :  { %v3303_v16 = vadd.f32 %v3302_v37, %v3301_v53  ;;  %v2272_v48 = vsel %vm2232_vm1, %v4926_v36, 0.0 }
 0x24e   :  { %v3304_v55 = vpop.f32.mrf.mxu1  ;;  %v2185_v23 = vpop.f32.mrf.mxu0  ;;  %2273 = vadd.xlane.f32.xlu0 %v2272_v48 }
 0x24f   :  { %v4931_v61 = vadd.f32 %v2185_v23, %v2049_v20  ;;  %v2052_v25 = vadd.f32 %v3303_v16, %v4772_v52 }
 0x250   :  { %v3305_v27 = vpop.f32.mrf.mxu1  ;;  %v2187_v38 = vpop.f32.mrf.mxu0 }
 0x251   :  { %v3306_v39 = vadd.f32 %v3305_v27, %v3304_v55  ;;  %v2275_v29 = vsel %vm2232_vm1, %v4931_v61, 0.0 }
 0x252   :  { %v3307_v28 = vpop.f32.mrf.mxu1  ;;  %v2188_v30 = vpop.f32.mrf.mxu0  ;;  %2276 = vadd.xlane.f32.xlu1 %v2275_v29 }
 0x253   :  { %v4936_v46 = vadd.f32 %v2188_v30, %v2052_v25  ;;  %v2057_v41 = vadd.f32 %v3306_v39, %v4777_v56 }
 0x254   :  { %v3308_v51 = vpop.f32.mrf.mxu1  ;;  %v2190_v6 = vpop.f32.mrf.mxu0 }
 0x255   :  { %v3309_v40 = vadd.f32 %v3308_v51, %v3307_v28  ;;  %v2278_v54 = vsel %vm2232_vm1, %v4936_v46, 0.0 }
 0x256   :  { %v3310_v32 = vpop.f32.mrf.mxu1  ;;  %v2193_v33 = vpop.f32.mrf.mxu0  ;;  %2279 = vadd.xlane.f32.xlu0 %v2278_v54 }
 0x257   :  { %v4941_v52 = vadd.f32 %v2193_v33, %v2057_v41  ;;  %v2060_v42 = vadd.f32 %v3309_v40, %v4784_v60 }
 0x258   :  { %v3311_v58 = vpop.f32.mrf.mxu1  ;;  %v2195_v13 = vpop.f32.mrf.mxu0 }
 0x259   :  { %v3312_v63 = vadd.f32 %v3311_v58, %v3310_v32  ;;  %v2281_v43 = vsel %vm2232_vm1, %v4941_v52, 0.0 }
 0x25a   :  { %v3313_v9 = vpop.f32.mrf.mxu1  ;;  %v2196_v12 = vpop.f32.mrf.mxu0  ;;  %2282 = vadd.xlane.f32.xlu1 %v2281_v43 }
 0x25b   :  { %v4946_v56 = vadd.f32 %v2196_v12, %v2060_v42  ;;  %v2065_v17 = vadd.f32 %v3312_v63, %v4786_v2 }
 0x25c   :  { %v3314_v34 = vpop.f32.mrf.mxu1  ;;  %v2198_v35 = vpop.f32.mrf.mxu0 }
 0x25d   :  { %v3315_v8 = vadd.f32 %v3314_v34, %v3313_v9  ;;  %v2284_v44 = vsel %vm2232_vm1, %v4946_v56, 0.0 }
 0x25e   :  { %v3316_v45 = vpop.f32.mrf.mxu1  ;;  %v2201_v11 = vpop.f32.mrf.mxu0  ;;  %2285 = vadd.xlane.f32.xlu0 %v2284_v44 }
 0x25f   :  { %v4951_v60 = vadd.f32 %v2201_v11, %v2065_v17  ;;  %v2068_v21 = vadd.f32 %v3315_v8, %v4790_v4 }
 0x260   :  { %v3317_v53 = vpop.f32.mrf.mxu1  ;;  %v2203_v18 = vpop.f32.mrf.mxu0 }
 0x261   :  { %v3318_v37 = vadd.f32 %v3317_v53, %v3316_v45  ;;  %v2287_v16 = vsel %vm2232_vm1, %v4951_v60, 0.0 }
 0x262   :  { %v3319_v20 = vpop.f32.mrf.mxu1  ;;  %v2204_v48 = vpop.f32.mrf.mxu0  ;;  %2288 = vadd.xlane.f32.xlu1 %v2287_v16 }
 0x263   :  { %v4956_v2 = vadd.f32 %v2204_v48, %v2068_v21  ;;  %v2073_v38 = vadd.f32 %v3318_v37, %v4794_v10 }
 0x264   :  { %v3320_v55 = vpop.f32.mrf.mxu1  ;;  %v2206_v23 = vpop.f32.mrf.mxu0 }
 0x265   :  { %v3321_v27 = vadd.f32 %v3320_v55, %v3319_v20  ;;  %v2290_v39 = vsel %vm2232_vm1, %v4956_v2, 0.0  ;;  %v4986_v23 = vpop.permute.xlu0 %2781 }
 0x266   :  { %v3322_v25 = vpop.f32.mrf.mxu1  ;;  %v2209_v29 = vpop.f32.mrf.mxu0  ;;  %2291 = vadd.xlane.f32.xlu0 %v2290_v39 }
 0x267   :  { %v4961_v4 = vadd.f32 %v2209_v29, %v2073_v38  ;;  %v2076_v6 = vadd.f32 %v3321_v27, %v4798_v14  ;;  %v4992_v39 = vpop.permute.xlu1 %2786 }
 0x268   :  { %v3323_v28 = vpop.f32.mrf.mxu1  ;;  %v2211_v30 = vpop.f32.mrf.mxu0 }
 0x269   :  { %v3324_v51 = vadd.f32 %v3323_v28, %v3322_v25  ;;  %v2293_v40 = vsel %vm2232_vm1, %v4961_v4, 0.0  ;;  %v4994_v25 = vpop.permute.xlu0 %2791  ;;  %v2768_v28 = vld [vmem:[%s5465_s4 + $0x78] sm:$0xff] }
 0x26a   :  { %v3325_v41 = vpop.f32.mrf.mxu1  ;;  %v2212_v54 = vpop.f32.mrf.mxu0  ;;  %2294 = vadd.xlane.f32.xlu1 %v2293_v40  ;;  %v2767_v40 = vld [vmem:[%s5465_s4 + $0x70] sm:$0xff] }
 0x26b   :  { %v4966_v10 = vadd.f32 %v2212_v54, %v2076_v6  ;;  %v2081_v13 = vadd.f32 %v3324_v51, %v4802_v19  ;;  %v4996_v29 = vpop.permute.xlu1 %2796 }
 0x26c   :  { %v3326_v32 = vpop.f32.mrf.mxu1  ;;  %v2214_v33 = vpop.f32.mrf.mxu0 }
 0x26d   :  { %v3327_v58 = vadd.f32 %v3326_v32, %v3325_v41  ;;  %v2296_v63 = vsel %vm2232_vm1, %v4966_v10, 0.0 }
 0x26e   :  { %v3328_v42 = vpop.f32.mrf.mxu1  ;;  %v2217_v43 = vpop.f32.mrf.mxu0  ;;  %2297 = vadd.xlane.f32.xlu0 %v2296_v63 }
 0x26f   :  { %v4971_v14 = vadd.f32 %v2217_v43, %v2081_v13  ;;  %v2084_v35 = vadd.f32 %v3327_v58, %v4806_v22  ;;  %v5003_v30 = vpop.permute.xlu1 %2806 }
 0x270   :  { %v3329_v9 = vpop.f32.mrf.mxu1  ;;  %v2219_v12 = vpop.f32.mrf.mxu0 }
 0x271   :  { %v3330_v34 = vadd.f32 %v3329_v9, %v3328_v42  ;;  %v2299_v8 = vsel %vm2232_vm1, %v4971_v14, 0.0 }
 0x272   :  { %v3331_v17 = vpop.f32.mrf.mxu1  ;;  %v2220_v44 = vpop.f32.mrf.mxu0  ;;  %2300 = vadd.xlane.f32.xlu1 %v2299_v8 }
 0x273   :  { %v4976_v19 = vadd.f32 %v2220_v44, %v2084_v35  ;;  %v2089_v18 = vadd.f32 %v3330_v34, %v4810_v26  ;;  %v5007_v6 = vpop.permute.xlu1 %2816 }
 0x274   :  { %v3332_v45 = vpop.f32.mrf.mxu1  ;;  %v2222_v11 = vpop.f32.mrf.mxu0 }
 0x275   :  { %v3333_v53 = vadd.f32 %v3332_v45, %v3331_v17  ;;  %v2302_v37 = vsel %vm2232_vm1, %v4976_v19, 0.0 }
 0x276   :  { %v2225_v21 = vpop.f32.mrf.mxu0  ;;  %2303 = vadd.xlane.f32.xlu0 %v2302_v37 }
 0x277   :  { %v4981_v16 = vadd.f32 %v2225_v21, %v2089_v18  ;;  %v2092_v20 = vadd.f32 %v3333_v53, %v4814_v31  ;;  %v4998_v31 = vpop.permute.xlu0 %2801  ;;  %v5014_v54 = vpop.permute.xlu1 %2826 }
 0x278   :  { %v2227_v22 = vpop.f32.mrf.mxu0 }
 0x279   :  { %v2305_v48 = vsel %vm2232_vm1, %v4981_v16, 0.0 }
 0x27a   :  { %v2228_v55 = vpop.f32.mrf.mxu0  ;;  %2306 = vadd.xlane.f32.xlu1 %v2305_v48 }
 0x27b   :  { %v4988_v27 = vadd.f32 %v2228_v55, %v2092_v20  ;;  %v5005_v51 = vpop.permute.xlu0 %2811  ;;  %v5018_v33 = vpop.permute.xlu1 %2836 }
 0x27c   :  { %v2230_v26 = vpop.f32.mrf.mxu0 }
 0x27d   :  { %v2308_v38 = vsel %vm2232_vm1, %v4988_v27, 0.0 }
 0x27e   :  { %2309 = vadd.xlane.f32.xlu0 %v2308_v38 }
 0x27f   :  { %v5012_v41 = vpop.permute.xlu0 %2821  ;;  %v5022_v13 = vpop.permute.xlu1 %2846 }
 0x283   :  { %v5016_v32 = vpop.permute.xlu0 %2831 }
 0x287   :  { %v5020_v58 = vpop.permute.xlu0 %2841 }
 0x28b   :  { %2856 = vperm.xlu1 %3352, %v2768_v28  }
 0x294   :  { %2851 = vperm.xlu0 %3351, %v2767_v40  }
 0x2a3   :  { %v2235_v63 = vpop.xlane.xlu0 %2234 }
 0x2a4   :  { %v2311_v42 = vmul.f32 0.020408163, %v2235_v63 }
 0x2a6   :  { %v5025_v43 = vsub.f32 %v4851_v1, %v2311_v42 }
 0x2a7   :  { %v2238_v9 = vpop.xlane.xlu1 %2237 }
 0x2a8   :  { %v2312_v12 = vmul.f32 0.020408163, %v2238_v9  ;;  %v2363_v35 = vmul.f32 %v5025_v43, %v5025_v43 }
 0x2aa   :  { %v5028_v34 = vsub.f32 %v4856_v5, %v2312_v12  ;;  %v2389_v45 = vsel %vm2232_vm1, %v2363_v35, 0.0 }
 0x2ab   :  { %v2241_v8 = vpop.xlane.xlu0 %2240 }
 0x2ac   :  { %v2313_v17 = vmul.f32 0.020408163, %v2241_v8  ;;  %v2364_v11 = vmul.f32 %v5028_v34, %v5028_v34 }
 0x2ae   :  { %v5033_v44 = vsub.f32 %v4862_v49, %v2313_v17  ;;  %v2392_v37 = vsel %vm2232_vm1, %v2364_v11, 0.0 }
 0x2af   :  { %2390 = vadd.xlane.f32.xlu1 %v2389_v45  ;;  %v2244_v1 = vpop.xlane.xlu0 %2243 }
 0x2b0   :  { %v2314_v53 = vmul.f32 0.020408163, %v2244_v1  ;;  %v2365_v5 = vmul.f32 %v5033_v44, %v5033_v44 }
 0x2b2   :  { %v5041_v18 = vsub.f32 %v4868_v62, %v2314_v53  ;;  %v2395_v21 = vsel %vm2232_vm1, %v2365_v5, 0.0 }
 0x2b3   :  { %v2247_v49 = vpop.xlane.xlu1 %2246  ;;  %2393 = vadd.xlane.f32.xlu0 %v2392_v37  ;;  %2396 = vadd.xlane.f32.xlu1 %v2395_v21 }
 0x2b4   :  { %v2315_v22 = vmul.f32 0.020408163, %v2247_v49  ;;  %v2366_v20 = vmul.f32 %v5041_v18, %v5041_v18 }
 0x2b6   :  { %v5048_v48 = vsub.f32 %v4874_v15, %v2315_v22  ;;  %v2398_v55 = vsel %vm2232_vm1, %v2366_v20, 0.0 }
 0x2b7   :  { %2399 = vadd.xlane.f32.xlu0 %v2398_v55  ;;  %v2250_v26 = vpop.xlane.xlu0 %2249 }
 0x2b8   :  { %v2316_v62 = vmul.f32 0.020408163, %v2250_v26  ;;  %v2367_v38 = vmul.f32 %v5048_v48, %v5048_v48 }
 0x2ba   :  { %v5054_v28 = vsub.f32 %v4880_v57, %v2316_v62  ;;  %v2401_v40 = vsel %vm2232_vm1, %v2367_v38, 0.0 }
 0x2bb   :  { %v2253_v63 = vpop.xlane.xlu1 %2252  ;;  %2402 = vadd.xlane.f32.xlu1 %v2401_v40 }
 0x2bc   :  { %v2317_v42 = vmul.f32 0.020408163, %v2253_v63  ;;  %v2368_v15 = vmul.f32 %v5054_v28, %v5054_v28 }
 0x2be   :  { %v5060_v9 = vsub.f32 %v4886_v3, %v2317_v42  ;;  %v2404_v12 = vsel %vm2232_vm1, %v2368_v15, 0.0 }
 0x2bf   :  { %2405 = vadd.xlane.f32.xlu0 %v2404_v12  ;;  %v2256_v35 = vpop.xlane.xlu0 %2255 }
 0x2c0   :  { %v2318_v8 = vmul.f32 0.020408163, %v2256_v35  ;;  %v2369_v57 = vmul.f32 %v5060_v9, %v5060_v9 }
 0x2c2   :  { %v5066_v17 = vsub.f32 %v4892_v0, %v2318_v8  ;;  %v2407_v45 = vsel %vm2232_vm1, %v2369_v57, 0.0 }
 0x2c3   :  { %v2259_v11 = vpop.xlane.xlu1 %2258  ;;  %2408 = vadd.xlane.f32.xlu1 %v2407_v45 }
 0x2c4   :  { %v2319_v1 = vmul.f32 0.020408163, %v2259_v11  ;;  %v2370_v3 = vmul.f32 %v5066_v17, %v5066_v17 }
 0x2c6   :  { %v5072_v53 = vsub.f32 %v4898_v47, %v2319_v1  ;;  %v2410_v5 = vsel %vm2232_vm1, %v2370_v3, 0.0 }
 0x2c7   :  { %2411 = vadd.xlane.f32.xlu0 %v2410_v5  ;;  %v2262_v37 = vpop.xlane.xlu0 %2261 }
 0x2c8   :  { %v2320_v21 = vmul.f32 0.020408163, %v2262_v37  ;;  %v2371_v0 = vmul.f32 %v5072_v53, %v5072_v53 }
 0x2ca   :  { %v5078_v49 = vsub.f32 %v4904_v24, %v2320_v21  ;;  %v2413_v22 = vsel %vm2232_vm1, %v2371_v0, 0.0 }
 0x2cb   :  { %v2265_v20 = vpop.xlane.xlu1 %2264  ;;  %2414 = vadd.xlane.f32.xlu1 %v2413_v22 }
 0x2cc   :  { %v2321_v55 = vmul.f32 0.020408163, %v2265_v20  ;;  %v2372_v47 = vmul.f32 %v5078_v49, %v5078_v49 }
 0x2ce   :  { %v5084_v26 = vsub.f32 %v4910_v50, %v2321_v55  ;;  %v2416_v62 = vsel %vm2232_vm1, %v2372_v47, 0.0 }
 0x2cf   :  { %2417 = vadd.xlane.f32.xlu0 %v2416_v62  ;;  %v2268_v38 = vpop.xlane.xlu0 %2267 }
 0x2d0   :  { %v2322_v40 = vmul.f32 0.020408163, %v2268_v38  ;;  %v2373_v24 = vmul.f32 %v5084_v26, %v5084_v26 }
 0x2d2   :  { %v5090_v63 = vsub.f32 %v4916_v59, %v2322_v40  ;;  %v2419_v42 = vsel %vm2232_vm1, %v2373_v24, 0.0 }
 0x2d3   :  { %v2271_v15 = vpop.xlane.xlu1 %2270  ;;  %2420 = vadd.xlane.f32.xlu1 %v2419_v42 }
 0x2d4   :  { %v2323_v12 = vmul.f32 0.020408163, %v2271_v15  ;;  %v2374_v50 = vmul.f32 %v5090_v63, %v5090_v63 }
 0x2d6   :  { %v5096_v35 = vsub.f32 %v4922_v7, %v2323_v12  ;;  %v2422_v8 = vsel %vm2232_vm1, %v2374_v50, 0.0 }
 0x2d7   :  { %2423 = vadd.xlane.f32.xlu0 %v2422_v8  ;;  %v2274_v57 = vpop.xlane.xlu0 %2273 }
 0x2d8   :  { %v2324_v45 = vmul.f32 0.020408163, %v2274_v57  ;;  %v2375_v59 = vmul.f32 %v5096_v35, %v5096_v35 }
 0x2da   :  { %v5102_v11 = vsub.f32 %v4926_v36, %v2324_v45  ;;  %v2425_v1 = vsel %vm2232_vm1, %v2375_v59, 0.0 }
 0x2db   :  { %v2277_v3 = vpop.xlane.xlu1 %2276  ;;  %2426 = vadd.xlane.f32.xlu1 %v2425_v1 }
 0x2dc   :  { %v2325_v5 = vmul.f32 0.020408163, %v2277_v3  ;;  %v2376_v7 = vmul.f32 %v5102_v11, %v5102_v11 }
 0x2de   :  { %v5108_v37 = vsub.f32 %v4931_v61, %v2325_v5  ;;  %v2428_v21 = vsel %vm2232_vm1, %v2376_v7, 0.0 }
 0x2df   :  { %2429 = vadd.xlane.f32.xlu0 %v2428_v21  ;;  %v2280_v0 = vpop.xlane.xlu0 %2279 }
 0x2e0   :  { %v2326_v22 = vmul.f32 0.020408163, %v2280_v0  ;;  %v2377_v36 = vmul.f32 %v5108_v37, %v5108_v37 }
 0x2e2   :  { %v5114_v20 = vsub.f32 %v4936_v46, %v2326_v22  ;;  %v2431_v55 = vsel %vm2232_vm1, %v2377_v36, 0.0 }
 0x2e3   :  { %v2283_v47 = vpop.xlane.xlu1 %2282  ;;  %2432 = vadd.xlane.f32.xlu1 %v2431_v55 }
 0x2e4   :  { %v2327_v62 = vmul.f32 0.020408163, %v2283_v47  ;;  %v2378_v61 = vmul.f32 %v5114_v20, %v5114_v20 }
 0x2e6   :  { %v5120_v38 = vsub.f32 %v4941_v52, %v2327_v62  ;;  %v2434_v40 = vsel %vm2232_vm1, %v2378_v61, 0.0 }
 0x2e7   :  { %2435 = vadd.xlane.f32.xlu0 %v2434_v40  ;;  %v2286_v24 = vpop.xlane.xlu0 %2285 }
 0x2e8   :  { %v2328_v42 = vmul.f32 0.020408163, %v2286_v24  ;;  %v2379_v46 = vmul.f32 %v5120_v38, %v5120_v38 }
 0x2ea   :  { %v5126_v15 = vsub.f32 %v4946_v56, %v2328_v42  ;;  %v2437_v12 = vsel %vm2232_vm1, %v2379_v46, 0.0 }
 0x2eb   :  { %v2289_v50 = vpop.xlane.xlu1 %2288  ;;  %2438 = vadd.xlane.f32.xlu1 %v2437_v12 }
 0x2ec   :  { %v2329_v8 = vmul.f32 0.020408163, %v2289_v50  ;;  %v2380_v52 = vmul.f32 %v5126_v15, %v5126_v15 }
 0x2ee   :  { %v5132_v57 = vsub.f32 %v4951_v60, %v2329_v8  ;;  %v2440_v45 = vsel %vm2232_vm1, %v2380_v52, 0.0 }
 0x2ef   :  { %2441 = vadd.xlane.f32.xlu0 %v2440_v45  ;;  %v2292_v59 = vpop.xlane.xlu0 %2291 }
 0x2f0   :  { %v2330_v1 = vmul.f32 0.020408163, %v2292_v59  ;;  %v2381_v56 = vmul.f32 %v5132_v57, %v5132_v57 }
 0x2f2   :  { %v5138_v3 = vsub.f32 %v4956_v2, %v2330_v1  ;;  %v2443_v5 = vsel %vm2232_vm1, %v2381_v56, 0.0 }
 0x2f3   :  { %v2295_v7 = vpop.xlane.xlu1 %2294  ;;  %2444 = vadd.xlane.f32.xlu1 %v2443_v5 }
 0x2f4   :  { %v2331_v21 = vmul.f32 0.020408163, %v2295_v7  ;;  %v2382_v60 = vmul.f32 %v5138_v3, %v5138_v3 }
 0x2f6   :  { %v5144_v0 = vsub.f32 %v4961_v4, %v2331_v21  ;;  %v2446_v22 = vsel %vm2232_vm1, %v2382_v60, 0.0 }
 0x2f7   :  { %2447 = vadd.xlane.f32.xlu0 %v2446_v22  ;;  %v2298_v36 = vpop.xlane.xlu0 %2297  ;;  %v2770_v22 = vld [vmem:[%s5465_s4 + $0x88] sm:$0xff] }
 0x2f8   :  { %v2332_v55 = vmul.f32 0.020408163, %v2298_v36  ;;  %v2383_v2 = vmul.f32 %v5144_v0, %v5144_v0  ;;  %v2772_v36 = vld [vmem:[%s5465_s4 + $0x98] sm:$0xff] }
 0x2fa   :  { %v5150_v47 = vsub.f32 %v4966_v10, %v2332_v55  ;;  %v2449_v62 = vsel %vm2232_vm1, %v2383_v2, 0.0  ;;  %v2769_v55 = vld [vmem:[%s5465_s4 + $0x80] sm:$0xff]  ;;  %v2776_v2 = vld [vmem:[%s5465_s4 + $0xb8] sm:$0xff] }
 0x2fb   :  { %v2301_v61 = vpop.xlane.xlu1 %2300  ;;  %2450 = vadd.xlane.f32.xlu1 %v2449_v62  ;;  %v2771_v62 = vld [vmem:[%s5465_s4 + $0x90] sm:$0xff] }
 0x2fc   :  { %v2333_v40 = vmul.f32 0.020408163, %v2301_v61  ;;  %v2384_v4 = vmul.f32 %v5150_v47, %v5150_v47  ;;  %v2773_v61 = vld [vmem:[%s5465_s4 + $0xa0] sm:$0xff] }
 0x2fe   :  { %v5156_v24 = vsub.f32 %v4971_v14, %v2333_v40  ;;  %v2452_v42 = vsel %vm2232_vm1, %v2384_v4, 0.0  ;;  %v2775_v40 = vld [vmem:[%s5465_s4 + $0xb0] sm:$0xff] }
 0x2ff   :  { %2453 = vadd.xlane.f32.xlu0 %v2452_v42  ;;  %v2304_v46 = vpop.xlane.xlu0 %2303 }
 0x300   :  { %v2334_v12 = vmul.f32 0.020408163, %v2304_v46  ;;  %v2385_v10 = vmul.f32 %v5156_v24, %v5156_v24 }
 0x302   :  { %v5162_v50 = vsub.f32 %v4976_v19, %v2334_v12  ;;  %v2455_v8 = vsel %vm2232_vm1, %v2385_v10, 0.0 }
 0x303   :  { %v2307_v52 = vpop.xlane.xlu1 %2306  ;;  %2456 = vadd.xlane.f32.xlu1 %v2455_v8 }
 0x304   :  { %v2335_v45 = vmul.f32 0.020408163, %v2307_v52  ;;  %v2386_v14 = vmul.f32 %v5162_v50, %v5162_v50 }
 0x306   :  { %v5168_v59 = vsub.f32 %v4981_v16, %v2335_v45  ;;  %v2458_v1 = vsel %vm2232_vm1, %v2386_v14, 0.0 }
 0x307   :  { %2459 = vadd.xlane.f32.xlu0 %v2458_v1  ;;  %v2310_v56 = vpop.xlane.xlu0 %2309  ;;  %v5204_v4 = vpop.permute.xlu1 %2856 }
 0x308   :  { %v2336_v5 = vmul.f32 0.020408163, %v2310_v56  ;;  %v2387_v19 = vmul.f32 %v5168_v59, %v5168_v59 }
 0x30a   :  { %v5174_v7 = vsub.f32 %v4988_v27, %v2336_v5  ;;  %v2461_v21 = vsel %vm2232_vm1, %v2387_v19, 0.0  ;;  %v2774_v27 = vld [vmem:[%s5465_s4 + $0xa8] sm:$0xff] }
 0x30b   :  { %2462 = vadd.xlane.f32.xlu1 %v2461_v21 }
 0x30c   :  { %v2388_v60 = vmul.f32 %v5174_v7, %v5174_v7 }
 0x30e   :  { %v2464_v16 = vsel %vm2232_vm1, %v2388_v60, 0.0 }
 0x30f   :  { %2465 = vadd.xlane.f32.xlu0 %v2464_v16  ;;  %v5206_v42 = vpop.permute.xlu0 %2851 }
 0x31c   :  { %2866 = vperm.xlu1 %3352, %v2770_v22  }
 0x320   :  { %2876 = vperm.xlu1 %3352, %v2772_v36  }
 0x324   :  { %2886 = vperm.xlu1 %3352, %v2774_v27   ;;  %v2493_v27 = vld [vmem:[%s5466_s3] sm:$0xff] }
 0x325   :  { %2861 = vperm.xlu0 %3351, %v2769_v55  }
 0x328   :  { %2896 = vperm.xlu1 %3352, %v2776_v2  }
 0x329   :  { %2871 = vperm.xlu0 %3351, %v2771_v62  }
 0x32d   :  { %2881 = vperm.xlu0 %3351, %v2773_v61  }
 0x331   :  { %2891 = vperm.xlu0 %3351, %v2775_v40  }
 0x338   :  { %v2391_v46 = vpop.xlane.xlu1 %2390 }
 0x339   :  { %v2467_v12 = vmul.f32 0.020408163, %v2391_v46  ;;  %v2495_v46 = vld [vmem:[%s5466_s3 + $0x10] sm:$0xff] }
 0x33b   :  { %v2519_v10 = vadd.f32 1e-05, %v2467_v12 }
 0x33c   :  { %v2397_v8 = vpop.xlane.xlu1 %2396  ;;  %v2394_v52 = vpop.xlane.xlu0 %2393 }
 0x33d   :  { %3830 = vrsqrt.f32 %v2519_v10  ;;  %v2469_v45 = vmul.f32 0.020408163, %v2397_v8  ;;  %v2468_v14 = vmul.f32 0.020408163, %v2394_v52  ;;  %v2494_v10 = vld [vmem:[%s5466_s3 + $0x8] sm:$0xff] }
 0x33f   :  { %v2521_v1 = vadd.f32 1e-05, %v2469_v45  ;;  %v2520_v56 = vadd.f32 1e-05, %v2468_v14 }
 0x340   :  { %v2400_v5 = vpop.xlane.xlu0 %2399 }
 0x341   :  { %3832 = vrsqrt.f32 %v2521_v1  ;;  %v2470_v19 = vmul.f32 0.020408163, %v2400_v5  ;;  %v2496_v5 = vld [vmem:[%s5466_s3 + $0x18] sm:$0xff] }
 0x342   :  { %3834 = vrsqrt.f32 %v2520_v56 }
 0x343   :  { %v2522_v21 = vadd.f32 1e-05, %v2470_v19 }
 0x344   :  { %v2403_v60 = vpop.xlane.xlu1 %2402 }
 0x345   :  { %3836 = vrsqrt.f32 %v2522_v21  ;;  %v2471_v16 = vmul.f32 0.020408163, %v2403_v60 }
 0x347   :  { %v2523_v22 = vadd.f32 1e-05, %v2471_v16 }
 0x348   :  { %v2406_v36 = vpop.xlane.xlu0 %2405 }
 0x349   :  { %3838 = vrsqrt.f32 %v2523_v22  ;;  %v2472_v55 = vmul.f32 0.020408163, %v2406_v36  ;;  %v2497_v36 = vld [vmem:[%s5466_s3 + $0x20] sm:$0xff] }
 0x34a   :  { %v3831_v2 = vpop.eup %3830 }
 0x34b   :  { %v2524_v62 = vadd.f32 1e-05, %v2472_v55  ;;  %v2571_v61 = vmul.f32 %v3831_v2, %v2493_v27 }
 0x34c   :  { %v2409_v40 = vpop.xlane.xlu1 %2408 }
 0x34d   :  { %3840 = vrsqrt.f32 %v2524_v62  ;;  %v2473_v12 = vmul.f32 0.020408163, %v2409_v40  ;;  %2599 = vperm.xlu1 %3352, %v2571_v61   ;;  %v2498_v40 = vld [vmem:[%s5466_s3 + $0x28] sm:$0xff] }
 0x34e   :  { %v3833_v8 = vpop.eup %3832 }
 0x34f   :  { %v3835_v52 = vpop.eup %3834  ;;  %v2525_v45 = vadd.f32 1e-05, %v2473_v12  ;;  %v2573_v14 = vmul.f32 %v3833_v8, %v2495_v46 }
 0x350   :  { %v2412_v1 = vpop.xlane.xlu0 %2411  ;;  %v2572_v56 = vmul.f32 %v3835_v52, %v2494_v10 }
 0x351   :  { %3842 = vrsqrt.f32 %v2525_v45  ;;  %v2474_v19 = vmul.f32 0.020408163, %v2412_v1  ;;  %2609 = vperm.xlu1 %3352, %v2573_v14   ;;  %v2499_v45 = vld [vmem:[%s5466_s3 + $0x30] sm:$0xff] }
 0x352   :  { %v3837_v21 = vpop.eup %3836  ;;  %2604 = vperm.xlu0 %3351, %v2572_v56  }
 0x353   :  { %v2526_v60 = vadd.f32 1e-05, %v2474_v19  ;;  %v2574_v16 = vmul.f32 %v3837_v21, %v2496_v5  ;;  %v2500_v21 = vld [vmem:[%s5466_s3 + $0x38] sm:$0xff] }
 0x354   :  { %v2415_v22 = vpop.xlane.xlu1 %2414 }
 0x355   :  { %3844 = vrsqrt.f32 %v2526_v60  ;;  %v2475_v27 = vmul.f32 0.020408163, %v2415_v22  ;;  %2614 = vperm.xlu1 %3352, %v2574_v16  }
 0x356   :  { %v3839_v55 = vpop.eup %3838 }
 0x357   :  { %v2527_v2 = vadd.f32 1e-05, %v2475_v27  ;;  %v2575_v62 = vmul.f32 %v3839_v55, %v2497_v36  ;;  %v2501_v55 = vld [vmem:[%s5466_s3 + $0x40] sm:$0xff] }
 0x358   :  { %v2418_v61 = vpop.xlane.xlu0 %2417 }
 0x359   :  { %3846 = vrsqrt.f32 %v2527_v2  ;;  %v2476_v46 = vmul.f32 0.020408163, %v2418_v61  ;;  %2619 = vperm.xlu0 %3351, %v2575_v62  }
 0x35a   :  { %v3841_v12 = vpop.eup %3840 }
 0x35b   :  { %v2528_v10 = vadd.f32 1e-05, %v2476_v46  ;;  %v2576_v8 = vmul.f32 %v3841_v12, %v2498_v40  ;;  %v2502_v12 = vld [vmem:[%s5466_s3 + $0x48] sm:$0xff] }
 0x35c   :  { %v2421_v52 = vpop.xlane.xlu1 %2420 }
 0x35d   :  { %3848 = vrsqrt.f32 %v2528_v10  ;;  %v2477_v14 = vmul.f32 0.020408163, %v2421_v52  ;;  %2624 = vperm.xlu1 %3352, %v2576_v8  }
 0x35e   :  { %v3843_v1 = vpop.eup %3842 }
 0x35f   :  { %v2529_v56 = vadd.f32 1e-05, %v2477_v14  ;;  %v2577_v5 = vmul.f32 %v3843_v1, %v2499_v45  ;;  %v2503_v1 = vld [vmem:[%s5466_s3 + $0x50] sm:$0xff] }
 0x360   :  { %v2424_v19 = vpop.xlane.xlu0 %2423 }
 0x361   :  { %3850 = vrsqrt.f32 %v2529_v56  ;;  %v2478_v60 = vmul.f32 0.020408163, %v2424_v19  ;;  %2629 = vperm.xlu0 %3351, %v2577_v5  }
 0x362   :  { %v3845_v16 = vpop.eup %3844 }
 0x363   :  { %v2530_v22 = vadd.f32 1e-05, %v2478_v60  ;;  %v2578_v36 = vmul.f32 %v3845_v16, %v2500_v21  ;;  %v2504_v16 = vld [vmem:[%s5466_s3 + $0x58] sm:$0xff] }
 0x364   :  { %v2427_v27 = vpop.xlane.xlu1 %2426 }
 0x365   :  { %3852 = vrsqrt.f32 %v2530_v22  ;;  %v2479_v2 = vmul.f32 0.020408163, %v2427_v27  ;;  %2634 = vperm.xlu1 %3352, %v2578_v36  }
 0x366   :  { %v3847_v62 = vpop.eup %3846 }
 0x367   :  { %v2531_v61 = vadd.f32 1e-05, %v2479_v2  ;;  %v2579_v40 = vmul.f32 %v3847_v62, %v2501_v55  ;;  %v2505_v62 = vld [vmem:[%s5466_s3 + $0x60] sm:$0xff] }
 0x368   :  { %v2430_v46 = vpop.xlane.xlu0 %2429 }
 0x369   :  { %3854 = vrsqrt.f32 %v2531_v61  ;;  %v2480_v10 = vmul.f32 0.020408163, %v2430_v46  ;;  %2639 = vperm.xlu0 %3351, %v2579_v40  }
 0x36a   :  { %v3849_v8 = vpop.eup %3848 }
 0x36b   :  { %v2532_v52 = vadd.f32 1e-05, %v2480_v10  ;;  %v2580_v45 = vmul.f32 %v3849_v8, %v2502_v12  ;;  %v2506_v8 = vld [vmem:[%s5466_s3 + $0x68] sm:$0xff] }
 0x36c   :  { %v2433_v14 = vpop.xlane.xlu1 %2432 }
 0x36d   :  { %3856 = vrsqrt.f32 %v2532_v52  ;;  %v2481_v56 = vmul.f32 0.020408163, %v2433_v14  ;;  %2644 = vperm.xlu1 %3352, %v2580_v45  }
 0x36e   :  { %v3851_v5 = vpop.eup %3850 }
 0x36f   :  { %v2533_v19 = vadd.f32 1e-05, %v2481_v56  ;;  %v2581_v21 = vmul.f32 %v3851_v5, %v2503_v1  ;;  %v2507_v5 = vld [vmem:[%s5466_s3 + $0x70] sm:$0xff] }
 0x370   :  { %v2436_v60 = vpop.xlane.xlu0 %2435 }
 0x371   :  { %3858 = vrsqrt.f32 %v2533_v19  ;;  %v2482_v22 = vmul.f32 0.020408163, %v2436_v60  ;;  %2649 = vperm.xlu0 %3351, %v2581_v21  }
 0x372   :  { %v3853_v36 = vpop.eup %3852 }
 0x373   :  { %v2534_v27 = vadd.f32 1e-05, %v2482_v22  ;;  %v2582_v55 = vmul.f32 %v3853_v36, %v2504_v16  ;;  %v2508_v36 = vld [vmem:[%s5466_s3 + $0x78] sm:$0xff] }
 0x374   :  { %v2439_v2 = vpop.xlane.xlu1 %2438 }
 0x375   :  { %3860 = vrsqrt.f32 %v2534_v27  ;;  %v2483_v61 = vmul.f32 0.020408163, %v2439_v2  ;;  %2654 = vperm.xlu1 %3352, %v2582_v55  }
 0x376   :  { %v3855_v40 = vpop.eup %3854 }
 0x377   :  { %v2535_v46 = vadd.f32 1e-05, %v2483_v61  ;;  %v2583_v12 = vmul.f32 %v3855_v40, %v2505_v62  ;;  %v2509_v40 = vld [vmem:[%s5466_s3 + $0x80] sm:$0xff] }
 0x378   :  { %v2442_v10 = vpop.xlane.xlu0 %2441 }
 0x379   :  { %3862 = vrsqrt.f32 %v2535_v46  ;;  %v2484_v52 = vmul.f32 0.020408163, %v2442_v10  ;;  %2659 = vperm.xlu0 %3351, %v2583_v12  }
 0x37a   :  { %v3857_v45 = vpop.eup %3856 }
 0x37b   :  { %v2536_v14 = vadd.f32 1e-05, %v2484_v52  ;;  %v2584_v1 = vmul.f32 %v3857_v45, %v2506_v8  ;;  %v2510_v45 = vld [vmem:[%s5466_s3 + $0x88] sm:$0xff] }
 0x37c   :  { %v2445_v56 = vpop.xlane.xlu1 %2444 }
 0x37d   :  { %3864 = vrsqrt.f32 %v2536_v14  ;;  %v2485_v19 = vmul.f32 0.020408163, %v2445_v56  ;;  %2664 = vperm.xlu1 %3352, %v2584_v1  }
 0x37e   :  { %v3859_v21 = vpop.eup %3858 }
 0x37f   :  { %v2537_v60 = vadd.f32 1e-05, %v2485_v19  ;;  %v2585_v16 = vmul.f32 %v3859_v21, %v2507_v5  ;;  %v2511_v21 = vld [vmem:[%s5466_s3 + $0x90] sm:$0xff] }
 0x380   :  { %v2448_v22 = vpop.xlane.xlu0 %2447 }
 0x381   :  { %3866 = vrsqrt.f32 %v2537_v60  ;;  %v2486_v27 = vmul.f32 0.020408163, %v2448_v22  ;;  %2669 = vperm.xlu0 %3351, %v2585_v16  }
 0x382   :  { %v3861_v55 = vpop.eup %3860 }
 0x383   :  { %v2538_v2 = vadd.f32 1e-05, %v2486_v27  ;;  %v2586_v62 = vmul.f32 %v3861_v55, %v2508_v36  ;;  %v2512_v55 = vld [vmem:[%s5466_s3 + $0x98] sm:$0xff] }
 0x384   :  { %v2451_v61 = vpop.xlane.xlu1 %2450 }
 0x385   :  { %3868 = vrsqrt.f32 %v2538_v2  ;;  %v2487_v46 = vmul.f32 0.020408163, %v2451_v61  ;;  %2674 = vperm.xlu1 %3352, %v2586_v62  }
 0x386   :  { %v3863_v12 = vpop.eup %3862 }
 0x387   :  { %v2539_v10 = vadd.f32 1e-05, %v2487_v46  ;;  %v2587_v8 = vmul.f32 %v3863_v12, %v2509_v40  ;;  %v2513_v12 = vld [vmem:[%s5466_s3 + $0xa0] sm:$0xff] }
 0x388   :  { %v2454_v52 = vpop.xlane.xlu0 %2453 }
 0x389   :  { %3870 = vrsqrt.f32 %v2539_v10  ;;  %v2488_v14 = vmul.f32 0.020408163, %v2454_v52  ;;  %2679 = vperm.xlu0 %3351, %v2587_v8  }
 0x38a   :  { %v3865_v1 = vpop.eup %3864 }
 0x38b   :  { %v2540_v56 = vadd.f32 1e-05, %v2488_v14  ;;  %v2588_v5 = vmul.f32 %v3865_v1, %v2510_v45  ;;  %v2514_v1 = vld [vmem:[%s5466_s3 + $0xa8] sm:$0xff] }
 0x38c   :  { %v2457_v19 = vpop.xlane.xlu1 %2456 }
 0x38d   :  { %3872 = vrsqrt.f32 %v2540_v56  ;;  %v2489_v60 = vmul.f32 0.020408163, %v2457_v19  ;;  %2684 = vperm.xlu1 %3352, %v2588_v5  }
 0x38e   :  { %v3867_v16 = vpop.eup %3866 }
 0x38f   :  { %v2541_v22 = vadd.f32 1e-05, %v2489_v60  ;;  %v2589_v36 = vmul.f32 %v3867_v16, %v2511_v21  ;;  %v2515_v60 = vld [vmem:[%s5466_s3 + $0xb0] sm:$0xff] }
 0x390   :  { %v2460_v27 = vpop.xlane.xlu0 %2459 }
 0x391   :  { %3874 = vrsqrt.f32 %v2541_v22  ;;  %v2490_v2 = vmul.f32 0.020408163, %v2460_v27  ;;  %2689 = vperm.xlu0 %3351, %v2589_v36   ;;  %v2516_v36 = vld [vmem:[%s5466_s3 + $0xb8] sm:$0xff] }
 0x392   :  { %v3869_v62 = vpop.eup %3868 }
 0x393   :  { %v2542_v61 = vadd.f32 1e-05, %v2490_v2  ;;  %v2590_v40 = vmul.f32 %v3869_v62, %v2512_v55  ;;  %v2517_v2 = vld [vmem:[%s5466_s3 + $0xc0] sm:$0xff] }
 0x394   :  { %v2463_v46 = vpop.xlane.xlu1 %2462 }
 0x395   :  { %3876 = vrsqrt.f32 %v2542_v61  ;;  %v2491_v10 = vmul.f32 0.020408163, %v2463_v46  ;;  %2694 = vperm.xlu1 %3352, %v2590_v40   ;;  %v2518_v40 = vld [vmem:[%s5466_s3 + $0xc8] sm:$0xff] }
 0x396   :  { %v3871_v8 = vpop.eup %3870 }
 0x397   :  { %v2543_v52 = vadd.f32 1e-05, %v2491_v10  ;;  %v2591_v45 = vmul.f32 %v3871_v8, %v2513_v12  ;;  %v2777_v12 = vld [vmem:[%s5465_s4 + $0xc0] sm:$0xff]  ;;  %v2778_v8 = vld [vmem:[%s5465_s4 + $0xc8] sm:$0xff] }
 0x398   :  { %v2466_v14 = vpop.xlane.xlu0 %2465 }
 0x399   :  { %3878 = vrsqrt.f32 %v2543_v52  ;;  %v2492_v56 = vmul.f32 0.020408163, %v2466_v14  ;;  %2699 = vperm.xlu0 %3351, %v2591_v45   ;;  %v5292_v52 = vpop.permute.xlu1 %2866 }
 0x39a   :  { %v3873_v5 = vpop.eup %3872 }
 0x39b   :  { %v2544_v19 = vadd.f32 1e-05, %v2492_v56  ;;  %v2592_v21 = vmul.f32 %v3873_v5, %v2514_v1 }
 0x39d   :  { %3880 = vrsqrt.f32 %v2544_v19  ;;  %2704 = vperm.xlu1 %3352, %v2592_v21   ;;  %v5296_v14 = vpop.permute.xlu1 %2876 }
 0x39e   :  { %v3875_v16 = vpop.eup %3874 }
 0x39f   :  { %v2593_v22 = vmul.f32 %v3875_v16, %v2515_v60 }
 0x3a0   :  { %v5294_v45 = vpop.permute.xlu0 %2861 }
 0x3a1   :  { %2709 = vperm.xlu0 %3351, %v2593_v22   ;;  %v5300_v56 = vpop.permute.xlu1 %2886 }
 0x3a2   :  { %v3877_v27 = vpop.eup %3876 }
 0x3a3   :  { %v2594_v55 = vmul.f32 %v3877_v27, %v2516_v36 }
 0x3a4   :  { %v5298_v1 = vpop.permute.xlu0 %2871 }
 0x3a5   :  { %2714 = vperm.xlu1 %3352, %v2594_v55   ;;  %v5304_v19 = vpop.permute.xlu1 %2896 }
 0x3a6   :  { %v3879_v62 = vpop.eup %3878 }
 0x3a7   :  { %v2595_v61 = vmul.f32 %v3879_v62, %v2517_v2 }
 0x3a8   :  { %v5302_v5 = vpop.permute.xlu0 %2881 }
 0x3a9   :  { %2719 = vperm.xlu0 %3351, %v2595_v61  }
 0x3aa   :  { %v3881_v46 = vpop.eup %3880 }
 0x3ab   :  { %v2596_v10 = vmul.f32 %v3881_v46, %v2518_v40 }
 0x3ac   :  { %v5306_v60 = vpop.permute.xlu0 %2891 }
 0x3ad   :  { %2901 = vperm.xlu0 %3351, %v2777_v12   ;;  %2724 = vperm.xlu1 %3352, %v2596_v10  }
 0x3b1   :  { %2906 = vperm.xlu1 %3352, %v2778_v8  }
 0x3c8   :  { %v2600_v21 = vpop.permute.xlu1 %2599 }
 0x3c9   :  { %v2727_v16 = vmul.f32 %v2600_v21, %v5025_v43 }
 0x3cb   :  { %v2909_v22 = vadd.f32 %v4986_v23, %v2727_v16 }
 0x3cc   :  { %v2610_v36 = vpop.permute.xlu1 %2609 }
 0x3cd   :  { %2935 = vst.msk [vmem:[%s5467_s5] sm:$0xff] %vm2232_vm1, %v2909_v22  ;;  %v2729_v27 = vmul.f32 %v2610_v36, %v5033_v44  ;;  %v2605_v55 = vpop.permute.xlu0 %2604 }
 0x3ce   :  { %v2728_v2 = vmul.f32 %v2605_v55, %v5028_v34 }
 0x3cf   :  { %v2911_v62 = vadd.f32 %v4994_v25, %v2729_v27 }
 0x3d0   :  { %v2910_v61 = vadd.f32 %v4992_v39, %v2728_v2  ;;  %v2615_v40 = vpop.permute.xlu1 %2614 }
 0x3d1   :  { %2937 = vst.msk [vmem:[%s5467_s5 + $0x10] sm:$0xff] %vm2232_vm1, %v2911_v62  ;;  %v2730_v23 = vmul.f32 %v2615_v40, %v5041_v18 }
 0x3d2   :  { %2936 = vst.msk [vmem:[%s5467_s5 + $0x8] sm:$0xff] %vm2232_vm1, %v2910_v61 }
 0x3d3   :  { %v2912_v43 = vadd.f32 %v4996_v29, %v2730_v23 }
 0x3d4   :  { %v2620_v34 = vpop.permute.xlu0 %2619 }
 0x3d5   :  { %2938 = vst.msk [vmem:[%s5467_s5 + $0x18] sm:$0xff] %vm2232_vm1, %v2912_v43  ;;  %v2731_v39 = vmul.f32 %v2620_v34, %v5048_v48 }
 0x3d7   :  { %v2913_v25 = vadd.f32 %v4998_v31, %v2731_v39 }
 0x3d8   :  { %v2625_v44 = vpop.permute.xlu1 %2624 }
 0x3d9   :  { %2939 = vst.msk [vmem:[%s5467_s5 + $0x20] sm:$0xff] %vm2232_vm1, %v2913_v25  ;;  %v2732_v18 = vmul.f32 %v2625_v44, %v5054_v28 }
 0x3db   :  { %v2914_v29 = vadd.f32 %v5003_v30, %v2732_v18 }
 0x3dc   :  { %v2630_v46 = vpop.permute.xlu0 %2629 }
 0x3dd   :  { %2940 = vst.msk [vmem:[%s5467_s5 + $0x28] sm:$0xff] %vm2232_vm1, %v2914_v29  ;;  %v2733_v48 = vmul.f32 %v2630_v46, %v5060_v9 }
 0x3df   :  { %v2915_v31 = vadd.f32 %v5005_v51, %v2733_v48 }
 0x3e0   :  { %v2635_v12 = vpop.permute.xlu1 %2634 }
 0x3e1   :  { %2941 = vst.msk [vmem:[%s5467_s5 + $0x30] sm:$0xff] %vm2232_vm1, %v2915_v31  ;;  %v2734_v28 = vmul.f32 %v2635_v12, %v5066_v17 }
 0x3e3   :  { %v2916_v30 = vadd.f32 %v5007_v6, %v2734_v28 }
 0x3e4   :  { %v2640_v10 = vpop.permute.xlu0 %2639 }
 0x3e5   :  { %2942 = vst.msk [vmem:[%s5467_s5 + $0x38] sm:$0xff] %vm2232_vm1, %v2916_v30  ;;  %v2735_v9 = vmul.f32 %v2640_v10, %v5072_v53 }
 0x3e7   :  { %v2917_v51 = vadd.f32 %v5012_v41, %v2735_v9 }
 0x3e8   :  { %v2645_v8 = vpop.permute.xlu1 %2644 }
 0x3e9   :  { %2943 = vst.msk [vmem:[%s5467_s5 + $0x40] sm:$0xff] %vm2232_vm1, %v2917_v51  ;;  %v2736_v17 = vmul.f32 %v2645_v8, %v5078_v49 }
 0x3eb   :  { %v2918_v6 = vadd.f32 %v5014_v54, %v2736_v17 }
 0x3ec   :  { %v2650_v21 = vpop.permute.xlu0 %2649 }
 0x3ed   :  { %2944 = vst.msk [vmem:[%s5467_s5 + $0x48] sm:$0xff] %vm2232_vm1, %v2918_v6  ;;  %v2737_v53 = vmul.f32 %v2650_v21, %v5084_v26 }
 0x3ef   :  { %v2919_v41 = vadd.f32 %v5016_v32, %v2737_v53 }
 0x3f0   :  { %v2655_v16 = vpop.permute.xlu1 %2654 }
 0x3f1   :  { %2945 = vst.msk [vmem:[%s5467_s5 + $0x50] sm:$0xff] %vm2232_vm1, %v2919_v41  ;;  %v2738_v49 = vmul.f32 %v2655_v16, %v5090_v63 }
 0x3f3   :  { %v2920_v54 = vadd.f32 %v5018_v33, %v2738_v49 }
 0x3f4   :  { %v2660_v22 = vpop.permute.xlu0 %2659 }
 0x3f5   :  { %2946 = vst.msk [vmem:[%s5467_s5 + $0x58] sm:$0xff] %vm2232_vm1, %v2920_v54  ;;  %v2739_v26 = vmul.f32 %v2660_v22, %v5096_v35 }
 0x3f7   :  { %v2921_v32 = vadd.f32 %v5020_v58, %v2739_v26 }
 0x3f8   :  { %v2665_v36 = vpop.permute.xlu1 %2664 }
 0x3f9   :  { %2947 = vst.msk [vmem:[%s5467_s5 + $0x60] sm:$0xff] %vm2232_vm1, %v2921_v32  ;;  %v2740_v63 = vmul.f32 %v2665_v36, %v5102_v11 }
 0x3fb   :  { %v2922_v33 = vadd.f32 %v5022_v13, %v2740_v63 }
 0x3fc   :  { %v2670_v27 = vpop.permute.xlu0 %2669 }
 0x3fd   :  { %2948 = vst.msk [vmem:[%s5467_s5 + $0x68] sm:$0xff] %vm2232_vm1, %v2922_v33  ;;  %v2741_v35 = vmul.f32 %v2670_v27, %v5108_v37 }
 0x3ff   :  { %v2923_v58 = vadd.f32 %v5206_v42, %v2741_v35 }
 0x400   :  { %v2675_v55 = vpop.permute.xlu1 %2674 }
 0x401   :  { %2949 = vst.msk [vmem:[%s5467_s5 + $0x70] sm:$0xff] %vm2232_vm1, %v2923_v58  ;;  %v2742_v11 = vmul.f32 %v2675_v55, %v5114_v20 }
 0x403   :  { %v2924_v13 = vadd.f32 %v5204_v4, %v2742_v11 }
 0x404   :  { %v2680_v2 = vpop.permute.xlu0 %2679 }
 0x405   :  { %2950 = vst.msk [vmem:[%s5467_s5 + $0x78] sm:$0xff] %vm2232_vm1, %v2924_v13  ;;  %v2743_v37 = vmul.f32 %v2680_v2, %v5120_v38 }
 0x407   :  { %v2925_v42 = vadd.f32 %v5294_v45, %v2743_v37 }
 0x408   :  { %v2685_v62 = vpop.permute.xlu1 %2684 }
 0x409   :  { %2951 = vst.msk [vmem:[%s5467_s5 + $0x80] sm:$0xff] %vm2232_vm1, %v2925_v42  ;;  %v2744_v20 = vmul.f32 %v2685_v62, %v5126_v15 }
 0x40b   :  { %v2926_v4 = vadd.f32 %v5292_v52, %v2744_v20 }
 0x40c   :  { %v2690_v61 = vpop.permute.xlu0 %2689 }
 0x40d   :  { %2952 = vst.msk [vmem:[%s5467_s5 + $0x88] sm:$0xff] %vm2232_vm1, %v2926_v4  ;;  %v2745_v38 = vmul.f32 %v2690_v61, %v5132_v57 }
 0x40f   :  { %v2927_v45 = vadd.f32 %v5298_v1, %v2745_v38 }
 0x410   :  { %v2695_v40 = vpop.permute.xlu1 %2694 }
 0x411   :  { %2953 = vst.msk [vmem:[%s5467_s5 + $0x90] sm:$0xff] %vm2232_vm1, %v2927_v45  ;;  %v2746_v15 = vmul.f32 %v2695_v40, %v5138_v3 }
 0x413   :  { %v2928_v52 = vadd.f32 %v5296_v14, %v2746_v15 }
 0x414   :  { %v2700_v23 = vpop.permute.xlu0 %2699 }
 0x415   :  { %2954 = vst.msk [vmem:[%s5467_s5 + $0x98] sm:$0xff] %vm2232_vm1, %v2928_v52  ;;  %v2747_v57 = vmul.f32 %v2700_v23, %v5144_v0 }
 0x417   :  { %v2929_v1 = vadd.f32 %v5302_v5, %v2747_v57 }
 0x418   :  { %v2705_v43 = vpop.permute.xlu1 %2704 }
 0x419   :  { %2955 = vst.msk [vmem:[%s5467_s5 + $0xa0] sm:$0xff] %vm2232_vm1, %v2929_v1  ;;  %v2748_v3 = vmul.f32 %v2705_v43, %v5150_v47 }
 0x41b   :  { %v2930_v14 = vadd.f32 %v5300_v56, %v2748_v3 }
 0x41c   :  { %v2710_v34 = vpop.permute.xlu0 %2709 }
 0x41d   :  { %2956 = vst.msk [vmem:[%s5467_s5 + $0xa8] sm:$0xff] %vm2232_vm1, %v2930_v14  ;;  %v2749_v0 = vmul.f32 %v2710_v34, %v5156_v24 }
 0x41f   :  { %v2931_v5 = vadd.f32 %v5306_v60, %v2749_v0 }
 0x420   :  { %v2715_v39 = vpop.permute.xlu1 %2714 }
 0x421   :  { %2957 = vst.msk [vmem:[%s5467_s5 + $0xb0] sm:$0xff] %vm2232_vm1, %v2931_v5  ;;  %v2750_v47 = vmul.f32 %v2715_v39, %v5162_v50 }
 0x423   :  { %v2932_v56 = vadd.f32 %v5304_v19, %v2750_v47 }
 0x424   :  { %v2720_v25 = vpop.permute.xlu0 %2719 }
 0x425   :  { %2958 = vst.msk [vmem:[%s5467_s5 + $0xb8] sm:$0xff] %vm2232_vm1, %v2932_v56  ;;  %v2751_v24 = vmul.f32 %v2720_v25, %v5168_v59 }
 0x428   :  { %v2725_v44 = vpop.permute.xlu1 %2724  ;;  %v2902_v60 = vpop.permute.xlu0 %2901 }
 0x429   :  { %v2933_v18 = vadd.f32 %v2902_v60, %v2751_v24  ;;  %v2752_v29 = vmul.f32 %v2725_v44, %v5174_v7 }
 0x42b   :  { %2959 = vst.msk [vmem:[%s5467_s5 + $0xc0] sm:$0xff] %vm2232_vm1, %v2933_v18 }
 0x42c   :  { %v2907_v50 = vpop.permute.xlu1 %2906 }
 0x42d   :  { %v2934_v19 = vadd.f32 %v2907_v50, %v2752_v29 }
 0x42f   :  { %2960 = vst.msk [vmem:[%s5467_s5 + $0xc8] sm:$0xff] %vm2232_vm1, %v2934_v19 }

</bundles_post_ra>
